<compile_context>
chip_gen: v5e
topology: v5e:2x2
jax: 0.10.0
libtpu: 0.0.40
codegen_flags: <defaults>
</compile_context>

<pallas_src>
import functools

import jax
import jax.numpy as jnp
from jax.experimental import pallas as pl
from jax.experimental.pallas import tpu as pltpu

LANE = 128  # lane-dense / MXU-friendly padding target


def _round_up(x, m):
    return ((x + m - 1) // m) * m


def gnn_node_kernel(h0_ref, ee_ref, row_ref, col_ref, eps_ref,
                    w1_ref, b1_ref, g1_ref, s1_ref,
                    w2_ref, b2_ref, go_ref, so_ref,
                    out_ref, *, num_layer):
    N = h0_ref.shape[0]          # padded node count
    E = col_ref.shape[1]         # padded edge count

    h = h0_ref[...]                                              # (N, Dp) f32

    # One-hot selectors built ONCE (reused by both layers), directly in bf16
    # ({0,1} is exact in bf16).  Padded edges have index -1 -> match nothing.
    # Gather selector: g_row[e, n] = 1 iff row[e] == n   ->  x_j = g_row @ h
    iota_en = jax.lax.broadcasted_iota(jnp.int32, (E, N), 1)
    g_row = (row_ref[...] == iota_en).astype(jnp.bfloat16)       # (E, N)
    # Scatter selector pre-transposed (lane-dense col, no XLU transpose):
    # g_col_t[n, e] = 1 iff col[e] == n                  ->  aggr = g_col_t @ msg
    iota_ne = jax.lax.broadcasted_iota(jnp.int32, (N, E), 0)
    g_col_t = (col_ref[...] == iota_ne).astype(jnp.bfloat16)     # (N, E)

    for l in range(num_layer):                                   # unrolled at trace time
        edge_emb = ee_ref[l]                                     # (E, Dp) f32 (XLA-precomputed)

        # gather x_j = h[row]  — bf16 operands, f32 accumulation (native MXU mode)
        x_j = jnp.dot(g_row, h.astype(jnp.bfloat16),
                      preferred_element_type=jnp.float32)        # (E, Dp)
        # message = relu(x_j + edge_emb)
        msg = jnp.maximum(x_j + edge_emb, 0.0)                   # (E, Dp)
        # scatter-add by col — plain matmul, bf16 operands, f32 accumulation
        aggr = jnp.dot(g_col_t, msg.astype(jnp.bfloat16),
                       preferred_element_type=jnp.float32)       # (N, Dp)

        # GIN combine; eps read from the SMEM scalar path
        pre = (1.0 + eps_ref[l]) * h + aggr                      # (N, Dp)

        # mlp: Linear(D,2D) -> BN(eval, folded) -> ReLU -> Linear(2D,D); kept in f32
        z1 = jnp.dot(pre, w1_ref[l], preferred_element_type=jnp.float32) + b1_ref[l]
        z1 = jnp.maximum(z1 * g1_ref[l] + s1_ref[l], 0.0)
        z2 = jnp.dot(z1, w2_ref[l], preferred_element_type=jnp.float32) + b2_ref[l]

        # outer BatchNorm1d (eval, folded)
        h = z2 * go_ref[l] + so_ref[l]
        if l != num_layer - 1:          # JK='last': ReLU on all layers except the last
            h = jnp.maximum(h, 0.0)

    out_ref[...] = h                    # lane-dense (Dp % 128 == 0) unmasked store


def gnn_node_pallas(h0, edge_emb, row, col, eps,
                    W1, B1, G1, S1, W2, B2, GO, SO):
    Np, Dp = h0.shape
    L = W1.shape[0]
    vmem = pl.BlockSpec(memory_space=pltpu.MemorySpace.VMEM)
    smem = pl.BlockSpec(memory_space=pltpu.MemorySpace.SMEM)
    kernel = functools.partial(gnn_node_kernel, num_layer=L)
    return pl.pallas_call(
        kernel,
        out_shape=jax.ShapeDtypeStruct((Np, Dp), jnp.float32),
        in_specs=[vmem, vmem, vmem, vmem, smem] + [vmem] * 8,
        out_specs=vmem,
        input_output_aliases={0: 0},     # donate the (padded) h0 buffer to the output
        compiler_params=pltpu.CompilerParams(vmem_limit_bytes=32 * 1024 * 1024),
    )(h0, edge_emb, row, col, eps, W1, B1, G1, S1, W2, B2, GO, SO)


def gin_layer_ref(h, edge_attr, row, col, p, apply_relu):
    """Pure-JAX f32 reference for one GIN layer (eval-mode), for correctness check."""
    edge_emb = edge_attr @ p['we'] + p['be']
    x_j = h[row]
    msg = jnp.maximum(x_j + edge_emb, 0.0)
    aggr = jax.ops.segment_sum(msg, col, num_segments=h.shape[0])
    pre = (1.0 + p['eps']) * h + aggr
    z1 = jnp.maximum((pre @ p['w1'] + p['b1']) * p['g1'] + p['s1'], 0.0)
    out = (z1 @ p['w2'] + p['b2']) * p['go'] + p['so']
    if apply_relu:
        out = jnp.maximum(out, 0.0)
    return out


def bn_fold(gamma, beta, running_mean, running_var, eps=1e-5):
    scale = gamma / jnp.sqrt(running_var + eps)
    shift = beta - running_mean * scale
    return scale, shift


def init_layer_params(key, emb_dim):
    """Deterministic init mirroring GINConv + outer BatchNorm1d shapes (eval mode)."""
    ks = jax.random.split(key, 3)
    D, H = emb_dim, 2 * emb_dim

    def lin(k, fan_in, fan_out):
        bound = 1.0 / jnp.sqrt(fan_in)
        kw, kb = jax.random.split(k)
        w = jax.random.uniform(kw, (fan_in, fan_out), jnp.float32, -bound, bound)
        b = jax.random.uniform(kb, (1, fan_out), jnp.float32, -bound, bound)
        return w, b

    we, be = lin(ks[0], 7, D)      # edge_encoder
    w1, b1 = lin(ks[1], D, H)      # mlp[0]
    w2, b2 = lin(ks[2], H, D)      # mlp[3]

    # BatchNorm eval defaults: gamma=1, beta=0, running_mean=0, running_var=1
    g1, s1 = bn_fold(jnp.ones((H,)), jnp.zeros((H,)), jnp.zeros((H,)), jnp.ones((H,)))
    go, so = bn_fold(jnp.ones((D,)), jnp.zeros((D,)), jnp.zeros((D,)), jnp.ones((D,)))

    return {
        'we': we, 'be': be,
        'w1': w1, 'b1': b1, 'g1': g1.reshape(1, H), 's1': s1.reshape(1, H),
        'w2': w2, 'b2': b2, 'go': go.reshape(1, D), 'so': so.reshape(1, D),
        'eps': jnp.float32(0.0),   # GIN eps parameter, init 0
    }


def gnn_node_forward(x_idx, edge_index, edge_attr, node_emb_weight, layer_params,
                     use_pallas=True):
    """GNN_node.forward, JK='last', residual=False, eval mode."""
    L = len(layer_params)
    D = node_emb_weight.shape[1]
    H = 2 * D
    N = x_idx.shape[0]
    E = edge_attr.shape[0]
    # node_encoder = Embedding(1, D); indices are all zero
    h0 = node_emb_weight[x_idx]                                  # (N, D)
    row, col = edge_index[0], edge_index[1]

    if not use_pallas:
        h = h0
        for layer in range(L):
            h = gin_layer_ref(h, edge_attr, row, col, layer_params[layer],
                              apply_relu=(layer != L - 1))
            # dropout: identity in eval mode
        return h

    # ---- lane-dense padding (perf review): every matmul dim / stored last dim -> 128.
    Np, Ep = _round_up(N, LANE), _round_up(E, LANE)
    Dp, Hp = _round_up(D, LANE), _round_up(H, LANE)

    # Hoisted edge encoder: one (E,7)@(7,L*D) matmul for all layers, done in XLA.
    we_cat = jnp.concatenate([p['we'] for p in layer_params], axis=1)   # (7, L*D)
    be_cat = jnp.concatenate([p['be'] for p in layer_params], axis=1)   # (1, L*D)
    edge_emb = (edge_attr @ we_cat + be_cat).reshape(E, L, D).transpose(1, 0, 2)  # (L,E,D)
    edge_emb = jnp.pad(edge_emb, ((0, 0), (0, Ep - E), (0, Dp - D)))

    h0_p = jnp.pad(h0, ((0, Np - N), (0, Dp - D)))
    # Padded edges get index -1: they match no node in the one-hot selectors.
    row_p = jnp.pad(row.astype(jnp.int32), (0, Ep - E), constant_values=-1)
    col_p = jnp.pad(col.astype(jnp.int32), (0, Ep - E), constant_values=-1)

    eps = jnp.stack([p['eps'] for p in layer_params]).astype(jnp.float32)   # (L,) -> SMEM

    def pad2(a, r, c):   # zero-pad (L, r0, c0) -> (L, r, c)
        return jnp.pad(a, ((0, 0), (0, r - a.shape[1]), (0, c - a.shape[2])))

    W1 = pad2(jnp.stack([p['w1'] for p in layer_params]), Dp, Hp)   # (L, Dp, Hp)
    B1 = pad2(jnp.stack([p['b1'] for p in layer_params]), 1, Hp)
    G1 = pad2(jnp.stack([p['g1'] for p in layer_params]), 1, Hp)
    S1 = pad2(jnp.stack([p['s1'] for p in layer_params]), 1, Hp)
    W2 = pad2(jnp.stack([p['w2'] for p in layer_params]), Hp, Dp)   # (L, Hp, Dp)
    B2 = pad2(jnp.stack([p['b2'] for p in layer_params]), 1, Dp)
    GO = pad2(jnp.stack([p['go'] for p in layer_params]), 1, Dp)
    SO = pad2(jnp.stack([p['so'] for p in layer_params]), 1, Dp)

    out = gnn_node_pallas(h0_p, edge_emb,
                          row_p.reshape(Ep, 1),    # gather selector source (sublane axis)
                          col_p.reshape(1, Ep),    # lane-dense, scatter selector source
                          eps, W1, B1, G1, S1, W2, B2, GO, SO)
    return out[:N, :D]


if __name__ == "__main__":
    key = jax.random.PRNGKey(0)
    N, E, D, num_layer = 16, 24, 32, 2

    k_node, k_edge_attr, k_ei, k_params = jax.random.split(key, 4)

    # node_encoder Embedding(1, D) weight ~ N(0, 1); node indices all zero
    node_emb_weight = jax.random.normal(k_node, (1, D), jnp.float32)
    x_idx = jnp.zeros((N,), jnp.int32)

    edge_index = jax.random.randint(k_ei, (2, E), 0, N, dtype=jnp.int32)
    edge_attr = jax.random.normal(k_edge_attr, (E, 7), jnp.float32)

    layer_params = [init_layer_params(k, D)
                    for k in jax.random.split(k_params, num_layer)]

    out = gnn_node_forward(x_idx, edge_index, edge_attr, node_emb_weight,
                           layer_params, use_pallas=True)
    out = jax.block_until_ready(out)

    ref = gnn_node_forward(x_idx, edge_index, edge_attr, node_emb_weight,
                           layer_params, use_pallas=False)
    ref = jax.block_until_ready(ref)

    assert out.shape == (N, D) and out.dtype == jnp.float32
    # Tolerance loosened vs. the f32 reference because the gather/scatter matmuls use
    # bf16 MXU operands (per perf review); worst-case bf16 rounding is ~0.4% relative.
    assert jnp.allclose(out, ref, atol=5e-2, rtol=5e-2), "mismatch vs pure-JAX reference"

    print("KERNEL_OK")
</pallas_src>

<mosaic_0001>
module attributes {stable_mosaic.version = 11 : i64} {
  func.func @gnn_node_kernel(%arg0: memref<128x128xf32, #tpu.memory_space<vmem>>, %arg1: memref<2x128x128xf32, #tpu.memory_space<vmem>>, %arg2: memref<128x1xi32, #tpu.memory_space<vmem>>, %arg3: memref<1x128xi32, #tpu.memory_space<vmem>>, %arg4: memref<2xf32, #tpu.memory_space<smem>>, %arg5: memref<2x128x128xf32, #tpu.memory_space<vmem>>, %arg6: memref<2x1x128xf32, #tpu.memory_space<vmem>>, %arg7: memref<2x1x128xf32, #tpu.memory_space<vmem>>, %arg8: memref<2x1x128xf32, #tpu.memory_space<vmem>>, %arg9: memref<2x128x128xf32, #tpu.memory_space<vmem>>, %arg10: memref<2x1x128xf32, #tpu.memory_space<vmem>>, %arg11: memref<2x1x128xf32, #tpu.memory_space<vmem>>, %arg12: memref<2x1x128xf32, #tpu.memory_space<vmem>>, %arg13: memref<128x128xf32, #tpu.memory_space<vmem>>) attributes {dimension_semantics = [], scalar_prefetch = 0 : i64, scratch_operands = 0 : i64, tpu.core_type = #tpu.core_type<tc>} {
    %c0 = arith.constant 0 : index
    %c0_0 = arith.constant 0 : index
    %0 = vector.load %arg0[%c0, %c0_0] : memref<128x128xf32, #tpu.memory_space<vmem>>, vector<128x128xf32>
    %1 = tpu.iota {dimensions = array<i32: 1>} : vector<128x128xi32>
    %c0_1 = arith.constant 0 : index
    %c0_2 = arith.constant 0 : index
    %2 = vector.load %arg2[%c0_1, %c0_2] : memref<128x1xi32, #tpu.memory_space<vmem>>, vector<128x1xi32>
    %3 = vector.broadcast %2 : vector<128x1xi32> to vector<128x128xi32>
    %4 = arith.cmpi eq, %3, %1 : vector<128x128xi32>
    %5 = arith.extui %4 : vector<128x128xi1> to vector<128x128xi32>
    %6 = arith.sitofp %5 : vector<128x128xi32> to vector<128x128xf32>
    %7 = arith.truncf %6 : vector<128x128xf32> to vector<128x128xbf16>
    %8 = tpu.iota {dimensions = array<i32: 0>} : vector<128x128xi32>
    %c0_3 = arith.constant 0 : index
    %c0_4 = arith.constant 0 : index
    %9 = vector.load %arg3[%c0_3, %c0_4] : memref<1x128xi32, #tpu.memory_space<vmem>>, vector<1x128xi32>
    %10 = vector.broadcast %9 : vector<1x128xi32> to vector<128x128xi32>
    %11 = arith.cmpi eq, %10, %8 : vector<128x128xi32>
    %12 = arith.extui %11 : vector<128x128xi1> to vector<128x128xi32>
    %13 = arith.sitofp %12 : vector<128x128xi32> to vector<128x128xf32>
    %14 = arith.truncf %13 : vector<128x128xf32> to vector<128x128xbf16>
    %c0_5 = arith.constant 0 : index
    %c0_6 = arith.constant 0 : index
    %c0_7 = arith.constant 0 : index
    %15 = vector.load %arg1[%c0_5, %c0_6, %c0_7] : memref<2x128x128xf32, #tpu.memory_space<vmem>>, vector<1x128x128xf32>
    %16 = vector.shape_cast %15 : vector<1x128x128xf32> to vector<128x128xf32>
    %17 = arith.truncf %0 : vector<128x128xf32> to vector<128x128xbf16>
    %cst = arith.constant dense<0.000000e+00> : vector<128x128xf32>
    %18 = tpu.matmul %7, %17, %cst {dimension_numbers = #tpu.dot_dimension_numbers<[1], [0], [0], [1], [0, 0, 1, 1], [], []>} : vector<128x128xbf16>, vector<128x128xbf16>, vector<128x128xf32> -> vector<128x128xf32>
    %19 = arith.addf %18, %16 : vector<128x128xf32>
    %cst_8 = arith.constant 0.000000e+00 : f32
    %20 = vector.broadcast %cst_8 : f32 to vector<128x128xf32>
    %21 = arith.maximumf %19, %20 : vector<128x128xf32>
    %22 = arith.truncf %21 : vector<128x128xf32> to vector<128x128xbf16>
    %cst_9 = arith.constant dense<0.000000e+00> : vector<128x128xf32>
    %23 = tpu.matmul %14, %22, %cst_9 {dimension_numbers = #tpu.dot_dimension_numbers<[1], [0], [0], [1], [0, 0, 1, 1], [], []>} : vector<128x128xbf16>, vector<128x128xbf16>, vector<128x128xf32> -> vector<128x128xf32>
    %c0_10 = arith.constant 0 : index
    %24 = memref.load %arg4[%c0_10] : memref<2xf32, #tpu.memory_space<smem>>
    %cst_11 = arith.constant 1.000000e+00 : f32
    %25 = arith.addf %cst_11, %24 : f32
    %26 = vector.broadcast %25 : f32 to vector<128x128xf32>
    %27 = arith.mulf %26, %0 : vector<128x128xf32>
    %28 = arith.addf %27, %23 : vector<128x128xf32>
    %c0_12 = arith.constant 0 : index
    %c0_13 = arith.constant 0 : index
    %c0_14 = arith.constant 0 : index
    %29 = vector.load %arg5[%c0_12, %c0_13, %c0_14] : memref<2x128x128xf32, #tpu.memory_space<vmem>>, vector<1x128x128xf32>
    %30 = vector.shape_cast %29 : vector<1x128x128xf32> to vector<128x128xf32>
    %cst_15 = arith.constant dense<0.000000e+00> : vector<128x128xf32>
    %31 = tpu.matmul %28, %30, %cst_15 {dimension_numbers = #tpu.dot_dimension_numbers<[1], [0], [0], [1], [0, 0, 1, 1], [], []>} : vector<128x128xf32>, vector<128x128xf32>, vector<128x128xf32> -> vector<128x128xf32>
    %c0_16 = arith.constant 0 : index
    %c0_17 = arith.constant 0 : index
    %c0_18 = arith.constant 0 : index
    %32 = vector.load %arg6[%c0_16, %c0_17, %c0_18] : memref<2x1x128xf32, #tpu.memory_space<vmem>>, vector<1x1x128xf32>
    %33 = vector.shape_cast %32 : vector<1x1x128xf32> to vector<1x128xf32>
    %34 = vector.broadcast %33 : vector<1x128xf32> to vector<128x128xf32>
    %35 = arith.addf %31, %34 : vector<128x128xf32>
    %c0_19 = arith.constant 0 : index
    %c0_20 = arith.constant 0 : index
    %c0_21 = arith.constant 0 : index
    %36 = vector.load %arg7[%c0_19, %c0_20, %c0_21] : memref<2x1x128xf32, #tpu.memory_space<vmem>>, vector<1x1x128xf32>
    %37 = vector.shape_cast %36 : vector<1x1x128xf32> to vector<1x128xf32>
    %38 = vector.broadcast %37 : vector<1x128xf32> to vector<128x128xf32>
    %39 = arith.mulf %35, %38 : vector<128x128xf32>
    %c0_22 = arith.constant 0 : index
    %c0_23 = arith.constant 0 : index
    %c0_24 = arith.constant 0 : index
    %40 = vector.load %arg8[%c0_22, %c0_23, %c0_24] : memref<2x1x128xf32, #tpu.memory_space<vmem>>, vector<1x1x128xf32>
    %41 = vector.shape_cast %40 : vector<1x1x128xf32> to vector<1x128xf32>
    %42 = vector.broadcast %41 : vector<1x128xf32> to vector<128x128xf32>
    %43 = arith.addf %39, %42 : vector<128x128xf32>
    %cst_25 = arith.constant 0.000000e+00 : f32
    %44 = vector.broadcast %cst_25 : f32 to vector<128x128xf32>
    %45 = arith.maximumf %43, %44 : vector<128x128xf32>
    %c0_26 = arith.constant 0 : index
    %c0_27 = arith.constant 0 : index
    %c0_28 = arith.constant 0 : index
    %46 = vector.load %arg9[%c0_26, %c0_27, %c0_28] : memref<2x128x128xf32, #tpu.memory_space<vmem>>, vector<1x128x128xf32>
    %47 = vector.shape_cast %46 : vector<1x128x128xf32> to vector<128x128xf32>
    %cst_29 = arith.constant dense<0.000000e+00> : vector<128x128xf32>
    %48 = tpu.matmul %45, %47, %cst_29 {dimension_numbers = #tpu.dot_dimension_numbers<[1], [0], [0], [1], [0, 0, 1, 1], [], []>} : vector<128x128xf32>, vector<128x128xf32>, vector<128x128xf32> -> vector<128x128xf32>
    %c0_30 = arith.constant 0 : index
    %c0_31 = arith.constant 0 : index
    %c0_32 = arith.constant 0 : index
    %49 = vector.load %arg10[%c0_30, %c0_31, %c0_32] : memref<2x1x128xf32, #tpu.memory_space<vmem>>, vector<1x1x128xf32>
    %50 = vector.shape_cast %49 : vector<1x1x128xf32> to vector<1x128xf32>
    %51 = vector.broadcast %50 : vector<1x128xf32> to vector<128x128xf32>
    %52 = arith.addf %48, %51 : vector<128x128xf32>
    %c0_33 = arith.constant 0 : index
    %c0_34 = arith.constant 0 : index
    %c0_35 = arith.constant 0 : index
    %53 = vector.load %arg11[%c0_33, %c0_34, %c0_35] : memref<2x1x128xf32, #tpu.memory_space<vmem>>, vector<1x1x128xf32>
    %54 = vector.shape_cast %53 : vector<1x1x128xf32> to vector<1x128xf32>
    %55 = vector.broadcast %54 : vector<1x128xf32> to vector<128x128xf32>
    %56 = arith.mulf %52, %55 : vector<128x128xf32>
    %c0_36 = arith.constant 0 : index
    %c0_37 = arith.constant 0 : index
    %c0_38 = arith.constant 0 : index
    %57 = vector.load %arg12[%c0_36, %c0_37, %c0_38] : memref<2x1x128xf32, #tpu.memory_space<vmem>>, vector<1x1x128xf32>
    %58 = vector.shape_cast %57 : vector<1x1x128xf32> to vector<1x128xf32>
    %59 = vector.broadcast %58 : vector<1x128xf32> to vector<128x128xf32>
    %60 = arith.addf %56, %59 : vector<128x128xf32>
    %cst_39 = arith.constant 0.000000e+00 : f32
    %61 = vector.broadcast %cst_39 : f32 to vector<128x128xf32>
    %62 = arith.maximumf %60, %61 : vector<128x128xf32>
    %c1 = arith.constant 1 : index
    %c0_40 = arith.constant 0 : index
    %c0_41 = arith.constant 0 : index
    %63 = vector.load %arg1[%c1, %c0_40, %c0_41] : memref<2x128x128xf32, #tpu.memory_space<vmem>>, vector<1x128x128xf32>
    %64 = vector.shape_cast %63 : vector<1x128x128xf32> to vector<128x128xf32>
    %65 = arith.truncf %62 : vector<128x128xf32> to vector<128x128xbf16>
    %cst_42 = arith.constant dense<0.000000e+00> : vector<128x128xf32>
    %66 = tpu.matmul %7, %65, %cst_42 {dimension_numbers = #tpu.dot_dimension_numbers<[1], [0], [0], [1], [0, 0, 1, 1], [], []>} : vector<128x128xbf16>, vector<128x128xbf16>, vector<128x128xf32> -> vector<128x128xf32>
    %67 = arith.addf %66, %64 : vector<128x128xf32>
    %cst_43 = arith.constant 0.000000e+00 : f32
    %68 = vector.broadcast %cst_43 : f32 to vector<128x128xf32>
    %69 = arith.maximumf %67, %68 : vector<128x128xf32>
    %70 = arith.truncf %69 : vector<128x128xf32> to vector<128x128xbf16>
    %cst_44 = arith.constant dense<0.000000e+00> : vector<128x128xf32>
    %71 = tpu.matmul %14, %70, %cst_44 {dimension_numbers = #tpu.dot_dimension_numbers<[1], [0], [0], [1], [0, 0, 1, 1], [], []>} : vector<128x128xbf16>, vector<128x128xbf16>, vector<128x128xf32> -> vector<128x128xf32>
    %c1_45 = arith.constant 1 : index
    %72 = memref.load %arg4[%c1_45] : memref<2xf32, #tpu.memory_space<smem>>
    %cst_46 = arith.constant 1.000000e+00 : f32
    %73 = arith.addf %cst_46, %72 : f32
    %74 = vector.broadcast %73 : f32 to vector<128x128xf32>
    %75 = arith.mulf %74, %62 : vector<128x128xf32>
    %76 = arith.addf %75, %71 : vector<128x128xf32>
    %c1_47 = arith.constant 1 : index
    %c0_48 = arith.constant 0 : index
    %c0_49 = arith.constant 0 : index
    %77 = vector.load %arg5[%c1_47, %c0_48, %c0_49] : memref<2x128x128xf32, #tpu.memory_space<vmem>>, vector<1x128x128xf32>
    %78 = vector.shape_cast %77 : vector<1x128x128xf32> to vector<128x128xf32>
    %cst_50 = arith.constant dense<0.000000e+00> : vector<128x128xf32>
    %79 = tpu.matmul %76, %78, %cst_50 {dimension_numbers = #tpu.dot_dimension_numbers<[1], [0], [0], [1], [0, 0, 1, 1], [], []>} : vector<128x128xf32>, vector<128x128xf32>, vector<128x128xf32> -> vector<128x128xf32>
    %c1_51 = arith.constant 1 : index
    %c0_52 = arith.constant 0 : index
    %c0_53 = arith.constant 0 : index
    %80 = vector.load %arg6[%c1_51, %c0_52, %c0_53] : memref<2x1x128xf32, #tpu.memory_space<vmem>>, vector<1x1x128xf32>
    %81 = vector.shape_cast %80 : vector<1x1x128xf32> to vector<1x128xf32>
    %82 = vector.broadcast %81 : vector<1x128xf32> to vector<128x128xf32>
    %83 = arith.addf %79, %82 : vector<128x128xf32>
    %c1_54 = arith.constant 1 : index
    %c0_55 = arith.constant 0 : index
    %c0_56 = arith.constant 0 : index
    %84 = vector.load %arg7[%c1_54, %c0_55, %c0_56] : memref<2x1x128xf32, #tpu.memory_space<vmem>>, vector<1x1x128xf32>
    %85 = vector.shape_cast %84 : vector<1x1x128xf32> to vector<1x128xf32>
    %86 = vector.broadcast %85 : vector<1x128xf32> to vector<128x128xf32>
    %87 = arith.mulf %83, %86 : vector<128x128xf32>
    %c1_57 = arith.constant 1 : index
    %c0_58 = arith.constant 0 : index
    %c0_59 = arith.constant 0 : index
    %88 = vector.load %arg8[%c1_57, %c0_58, %c0_59] : memref<2x1x128xf32, #tpu.memory_space<vmem>>, vector<1x1x128xf32>
    %89 = vector.shape_cast %88 : vector<1x1x128xf32> to vector<1x128xf32>
    %90 = vector.broadcast %89 : vector<1x128xf32> to vector<128x128xf32>
    %91 = arith.addf %87, %90 : vector<128x128xf32>
    %cst_60 = arith.constant 0.000000e+00 : f32
    %92 = vector.broadcast %cst_60 : f32 to vector<128x128xf32>
    %93 = arith.maximumf %91, %92 : vector<128x128xf32>
    %c1_61 = arith.constant 1 : index
    %c0_62 = arith.constant 0 : index
    %c0_63 = arith.constant 0 : index
    %94 = vector.load %arg9[%c1_61, %c0_62, %c0_63] : memref<2x128x128xf32, #tpu.memory_space<vmem>>, vector<1x128x128xf32>
    %95 = vector.shape_cast %94 : vector<1x128x128xf32> to vector<128x128xf32>
    %cst_64 = arith.constant dense<0.000000e+00> : vector<128x128xf32>
    %96 = tpu.matmul %93, %95, %cst_64 {dimension_numbers = #tpu.dot_dimension_numbers<[1], [0], [0], [1], [0, 0, 1, 1], [], []>} : vector<128x128xf32>, vector<128x128xf32>, vector<128x128xf32> -> vector<128x128xf32>
    %c1_65 = arith.constant 1 : index
    %c0_66 = arith.constant 0 : index
    %c0_67 = arith.constant 0 : index
    %97 = vector.load %arg10[%c1_65, %c0_66, %c0_67] : memref<2x1x128xf32, #tpu.memory_space<vmem>>, vector<1x1x128xf32>
    %98 = vector.shape_cast %97 : vector<1x1x128xf32> to vector<1x128xf32>
    %99 = vector.broadcast %98 : vector<1x128xf32> to vector<128x128xf32>
    %100 = arith.addf %96, %99 : vector<128x128xf32>
    %c1_68 = arith.constant 1 : index
    %c0_69 = arith.constant 0 : index
    %c0_70 = arith.constant 0 : index
    %101 = vector.load %arg11[%c1_68, %c0_69, %c0_70] : memref<2x1x128xf32, #tpu.memory_space<vmem>>, vector<1x1x128xf32>
    %102 = vector.shape_cast %101 : vector<1x1x128xf32> to vector<1x128xf32>
    %103 = vector.broadcast %102 : vector<1x128xf32> to vector<128x128xf32>
    %104 = arith.mulf %100, %103 : vector<128x128xf32>
    %c1_71 = arith.constant 1 : index
    %c0_72 = arith.constant 0 : index
    %c0_73 = arith.constant 0 : index
    %105 = vector.load %arg12[%c1_71, %c0_72, %c0_73] : memref<2x1x128xf32, #tpu.memory_space<vmem>>, vector<1x1x128xf32>
    %106 = vector.shape_cast %105 : vector<1x1x128xf32> to vector<1x128xf32>
    %107 = vector.broadcast %106 : vector<1x128xf32> to vector<128x128xf32>
    %108 = arith.addf %104, %107 : vector<128x128xf32>
    %c0_74 = arith.constant 0 : index
    %c0_75 = arith.constant 0 : index
    %109 = vector.load %arg13[%c0_74, %c0_75] : memref<128x128xf32, #tpu.memory_space<vmem>>, vector<128x128xf32>
    tpu.vector_store %arg13[%c0_74, %c0_75], %108 {strides = array<i32>} : memref<128x128xf32, #tpu.memory_space<vmem>>, vector<128x128xf32>,
    return
  }
}

</mosaic_0001>

<bundles_post_ra>
// kernel: tpu_custom_call.1
= control target key start
LH: loop header
LB: loop body
LE: loop exit
PB: predicated region body
PF: predicated region fallthrough
CT: control target
= control target key end

     0   :  { %18 = vsyncpa [#allocation3], 0  ;;  %s2446_s0 = inlined_call_operand.hbm [shape: f32[128,128], index: 0, kind: input, shape index: {}, may-alias: {0,13}]   ;;  %s2447_s1 = inlined_call_operand.vmem [shape: f32[2,128,128], index: 1, kind: input, shape index: {}]   ;;  %s2448_s2 = inlined_call_operand.vmem [shape: s32[128,1], index: 2, kind: input, shape index: {}]   ;;  %s2449_s3 = inlined_call_operand.vmem [shape: s32[1,128], index: 3, kind: input, shape index: {}]   ;;  %s2450_s4 = inlined_call_operand.vmem [shape: f32[2], index: 4, kind: input, shape index: {}]   ;;  %s2451_s5 = inlined_call_operand.hbm [shape: f32[2,128,128], index: 5, kind: input, shape index: {}]   ;;  %s2452_s6 = inlined_call_operand.vmem [shape: f32[2,1,128], index: 6, kind: input, shape index: {}]   ;;  %s2453_s7 = inlined_call_operand.vmem [shape: f32[2,1,128], index: 7, kind: input, shape index: {}]   ;;  %s2454_s8 = inlined_call_operand.vmem [shape: f32[2,1,128], index: 8, kind: input, shape index: {}]   ;;  %s2455_s9 = inlined_call_operand.hbm [shape: f32[2,128,128], index: 9, kind: input, shape index: {}]   ;;  %s2456_s10 = inlined_call_operand.vmem [shape: f32[2,1,128], index: 10, kind: input, shape index: {}]   ;;  %s2457_s11 = inlined_call_operand.vmem [shape: f32[2,1,128], index: 11, kind: input, shape index: {}]   ;;  %s2458_s12 = inlined_call_operand.vmem [shape: f32[2,1,128], index: 12, kind: input, shape index: {}]   ;;  %s2459_s13 = inlined_call_operand.hbm [shape: f32[128,128], index: 13, kind: output, shape index: {}, may-alias: {0,13}]  }
   0x1   :  { %19 = vsyncpa [#allocation5], 0 }
   0x2   :  { %20 = vsyncpa [#allocation8], 0 }
   0x3   :  { %21 = vsyncpa [#allocation4], 0  ;;  %s54_s27 = sshll.u32 %s2451_s5, 4  ;;  %s1534_s28 = smov [#allocation7]   ;;  %s55_s27 = int_to_ptr.hbm [resolvable:$true] %s54_s27 }
   0x4   :  { %s56_s29 = sshll.u32 %s1534_s28, 4  ;;  %s26_s15 = sshll.u32 %s2446_s0, 4  ;;  %s57_s29 = int_to_ptr.vmem [resolvable:$true] %s56_s29  ;;  %s27_s15 = int_to_ptr.hbm [resolvable:$true] %s26_s15 }
   0x5   :  { %s1535_s16 = smov 128   ;;  %s1536_s17 = smov 8  }
   0x6   :  { %62 = dma.hbm_to_vmem [thread:$0]  %s55_s27, 4096, %s57_s29, [#allocation8], %s1535_s16, %s1535_s16, %s1536_s17  }
   0x7   :  { %s1537_s18 = smov [#allocation2]   ;;  %s46_s5 = sshll.u32 %s2450_s4, 4  ;;  %s47_s5 = int_to_ptr.vmem [resolvable:$true] %s46_s5 }
   0x8   :  { %s28_s19 = sshll.u32 %s1537_s18, 4  ;;  %s73_s23 = sshll.u32 %s2455_s9, 4  ;;  %s29_s19 = int_to_ptr.vmem [resolvable:$true] %s28_s19  ;;  %s74_s23 = int_to_ptr.hbm [resolvable:$true] %s73_s23 }
   0x9   :  { %34 = dma.hbm_to_vmem [thread:$0]  %s27_s15, 2048, %s29_s19, [#allocation3], %s1535_s16, %s1535_s16, %s1536_s17  }
   0xa   :  { %s1538_s24 = smov [#allocation6]   ;;  %s1539_s25 = smov [#allocation9]  }
   0xb   :  { %49 = dma.vmem_to_smem %s47_s5, 16, %s1538_s24, [#allocation5]  }
   0xc   :  { %s75_s26 = sshll.u32 %s1539_s25, 4  ;;  %s76_s26 = int_to_ptr.vmem [resolvable:$true] %s75_s26 }
   0xd   :  { %81 = dma.hbm_to_vmem [thread:$0]  %s74_s23, 4096, %s76_s26, [#allocation8], %s1535_s16, %s1535_s16, %s1536_s17  }
   0xe   :  { %1526 = dma.done.wait [#allocation3], 2048  }
   0xf   :  { %1527 = vsyncadd [#allocation3], 4294965248 }
  0x10   :  { %1528 = dma.done.wait [#allocation5], 16  }
  0x11   :  { %1529 = vsyncadd [#allocation5], 4294967280 }
  0x12   :  { %1530 = dma.done.wait [#allocation8], 8192  }
  0x13   :  { %1531 = vsyncadd [#allocation8], 4294959104 }
  0x14   :  { %104 = sfence }
  0x15   :  { %v125_v0 = vld [vmem:[%s2448_s2 + $0x10] sm:$0xff]  ;;  %v123_v1 = vld [vmem:[%s2448_s2] sm:$0xff]  ;;  %v1540_v2 = vmov 0   ;;  %v126_v4 = vld [vmem:[%s2448_s2 + $0x18] sm:$0xff]  ;;  %v121_v42 = vlaneseq  ;;  %v1541_v46 = vmov 1.0|1.0  }
  0x16   :  { %1403 = vset.pattern.permute.xlu1 %v1540_v2  ;;  %1402 = vset.pattern.permute.xlu0 %v1540_v2  ;;  %v127_v3 = vld [vmem:[%s2448_s2 + $0x20] sm:$0xff]  ;;  %v124_v5 = vld [vmem:[%s2448_s2 + $0x8] sm:$0xff]  ;;  %v1652_v7 = vld [vmem:[#allocation2 + $0x70] sm:$0xff]  ;;  %s1259_s27 = sshll.u32 %s2459_s13, 4  ;;  %s1260_s27 = int_to_ptr.hbm [resolvable:$true] %s1259_s27 }
  0x17   :  { %146 = vperm.xlu1 %1403, %v125_v0   ;;  %140 = vperm.xlu0 %1402, %v123_v1   ;;  %v128_v6 = vld [vmem:[%s2448_s2 + $0x28] sm:$0xff]  ;;  %v1654_v8 = vld [vmem:[#allocation2 + $0x78] sm:$0xff]  ;;  %v1658_v10 = vld [vmem:[#allocation2 + $0x60] sm:$0xff]  ;;  %v122_v43 = vand.u32 127, %v121_v42 }
  0x18   :  { %1404 = vset.pattern.permute.xlu2 %v1540_v2  ;;  %v341_v9 = vpack.c.bf16 %v1654_v8, %v1652_v7  ;;  %v1660_v11 = vld [vmem:[#allocation2 + $0x68] sm:$0xff]  ;;  %v130_v12 = vld [vmem:[%s2448_s2 + $0x38] sm:$0xff]  ;;  %v129_v13 = vld [vmem:[%s2448_s2 + $0x30] sm:$0xff] }
  0x19   :  { %152 = vperm.xlu2 %1404, %v127_v3   ;;  %v340_v14 = vpack.c.bf16 %v1660_v11, %v1658_v10  ;;  %v1670_v15 = vld [vmem:[#allocation2 + $0x50] sm:$0xff]  ;;  %v1672_v16 = vld [vmem:[#allocation2 + $0x58] sm:$0xff]  ;;  %v131_v17 = vld [vmem:[%s2448_s2 + $0x40] sm:$0xff] }
  0x1a   :  { %342 = vmatpush.bf16.msra.mxu0 %v341_v9  ;;  %v339_v18 = vpack.c.bf16 %v1672_v16, %v1670_v15  ;;  %v1679_v19 = vld [vmem:[#allocation2 + $0x40] sm:$0xff]  ;;  %v1681_v20 = vld [vmem:[#allocation2 + $0x48] sm:$0xff]  ;;  %v133_v21 = vld [vmem:[%s2448_s2 + $0x50] sm:$0xff] }
  0x1b   :  { %v132_v22 = vld [vmem:[%s2448_s2 + $0x48] sm:$0xff]  ;;  %v338_v23 = vpack.c.bf16 %v1681_v20, %v1679_v19  ;;  %v1691_v24 = vld [vmem:[#allocation2 + $0x30] sm:$0xff]  ;;  %v1693_v25 = vld [vmem:[#allocation2 + $0x38] sm:$0xff] }
  0x1c   :  { %v134_v26 = vld [vmem:[%s2448_s2 + $0x58] sm:$0xff]  ;;  %v337_v27 = vpack.c.bf16 %v1693_v25, %v1691_v24  ;;  %v136_v28 = vld [vmem:[%s2448_s2 + $0x68] sm:$0xff]  ;;  %v135_v29 = vld [vmem:[%s2448_s2 + $0x60] sm:$0xff] }
  0x1d   :  { %v137_v30 = vld [vmem:[%s2448_s2 + $0x70] sm:$0xff]  ;;  %v138_v31 = vld [vmem:[%s2448_s2 + $0x78] sm:$0xff]  ;;  %v1712_v32 = vld [vmem:[#allocation2 + $0x20] sm:$0xff] }
  0x1e   :  { %343 = vmatpush.bf16.msra.mxu0 %v340_v14  ;;  %v1714_v33 = vld [vmem:[#allocation2 + $0x28] sm:$0xff]  ;;  %v1718_v35 = vld [vmem:[#allocation2 + $0x10] sm:$0xff]  ;;  %v1720_v36 = vld [vmem:[#allocation2 + $0x18] sm:$0xff] }
  0x1f   :  { %149 = vperm.xlu1 %1403, %v126_v4   ;;  %143 = vperm.xlu0 %1402, %v124_v5   ;;  %v336_v34 = vpack.c.bf16 %v1714_v33, %v1712_v32  ;;  %v335_v37 = vpack.c.bf16 %v1720_v36, %v1718_v35  ;;  %v1724_v38 = vld [vmem:[#allocation2] sm:$0xff]  ;;  %v1726_v39 = vld [vmem:[#allocation2 + $0x8] sm:$0xff]  ;;  %v1340_v3 = vld [vmem:[%s2447_s1 + $0x90] sm:$0xff] }
  0x20   :  { %v334_v40 = vpack.c.bf16 %v1726_v39, %v1724_v38  ;;  %v1338_v49 = vld [vmem:[%s2447_s1 + $0x80] sm:$0xff]  ;;  %v1339_v52 = vld [vmem:[%s2447_s1 + $0x88] sm:$0xff] }
  0x21   :  { %155 = vperm.xlu2 %1404, %v128_v6  }
  0x22   :  { %344 = vmatpush.bf16.msra.mxu0 %v339_v18 }
  0x26   :  { %345 = vmatpush.bf16.msra.mxu0 %v338_v23 }
  0x27   :  { %161 = vperm.xlu1 %1403, %v130_v12   ;;  %158 = vperm.xlu0 %1402, %v129_v13  }
  0x29   :  { %164 = vperm.xlu2 %1404, %v131_v17  }
  0x2a   :  { %346 = vmatpush.bf16.msra.mxu0 %v337_v27 }
  0x2e   :  { %347 = vmatpush.bf16.msra.mxu0 %v336_v34 }
  0x2f   :  { %170 = vperm.xlu1 %1403, %v133_v21   ;;  %167 = vperm.xlu0 %1402, %v132_v22  }
  0x31   :  { %173 = vperm.xlu2 %1404, %v134_v26  }
  0x32   :  { %348 = vmatpush.bf16.msra.mxu0 %v335_v37  ;;  %v330_v37 = vld [vmem:[%s2447_s1 + $0x60] sm:$0xff] }
  0x36   :  { %349 = vmatpush.bf16.msra.mxu0 %v334_v40 }
  0x37   :  { %179 = vperm.xlu1 %1403, %v136_v28   ;;  %176 = vperm.xlu0 %1402, %v135_v29   ;;  %v332_v29 = vld [vmem:[%s2447_s1 + $0x70] sm:$0xff] }
  0x39   :  { %182 = vperm.xlu2 %1404, %v137_v30   ;;  %v331_v30 = vld [vmem:[%s2447_s1 + $0x68] sm:$0xff] }
  0x3f   :  { %185 = vperm.xlu0 %1402, %v138_v31   ;;  %v333_v31 = vld [vmem:[%s2447_s1 + $0x78] sm:$0xff] }
  0x73   :  { %v153_v50 = vpop.permute.xlu2 %152 }
  0x74   :  { %vm191_vm6 = vcmp.eq.s32.totalorder %v153_v50, %v122_v43 }
  0x7b   :  { %v156_v51 = vpop.permute.xlu2 %155 }
  0x7c   :  { %vm192_vm7 = vcmp.eq.s32.totalorder %v156_v51, %v122_v43  ;;  %v328_v51 = vld [vmem:[%s2447_s1 + $0x50] sm:$0xff] }
  0x7d   :  { %vm1745_vm8 = vmpackc.low %vm192_vm7, %vm191_vm6 }
  0x83   :  { %v165_v57 = vpop.permute.xlu2 %164 }
  0x84   :  { %vm195_vm12 = vcmp.eq.s32.totalorder %v165_v57, %v122_v43  ;;  %v327_v57 = vld [vmem:[%s2447_s1 + $0x48] sm:$0xff] }
  0x89   :  { %v141_v41 = vpop.permute.xlu0 %140  ;;  %v147_v47 = vpop.permute.xlu1 %146 }
  0x8a   :  { %vm187_vm1 = vcmp.eq.s32.totalorder %v141_v41, %v122_v43  ;;  %vm189_vm3 = vcmp.eq.s32.totalorder %v147_v47, %v122_v43 }
  0x8b   :  { %v174_v59 = vpop.permute.xlu2 %173 }
  0x8c   :  { %vm198_vm15 = vcmp.eq.s32.totalorder %v174_v59, %v122_v43 }
  0x91   :  { %v144_v44 = vpop.permute.xlu0 %143  ;;  %v150_v48 = vpop.permute.xlu1 %149 }
  0x92   :  { %vm188_vm0 = vcmp.eq.s32.totalorder %v144_v44, %v122_v43  ;;  %vm190_vm4 = vcmp.eq.s32.totalorder %v150_v48, %v122_v43  ;;  %v329_v44 = vld [vmem:[%s2447_s1 + $0x58] sm:$0xff] }
  0x93   :  { %vm1731_vm2 = vmpackc.low %vm188_vm0, %vm187_vm1  ;;  %v183_v2 = vpop.permute.xlu2 %182 }
  0x94   :  { %1307 = vmatmul.msk.bf16.vlgmr.msra.gmra.mxu0 %vm1731_vm2, %v1541_v46  ;;  %vm1738_vm5 = vmpackc.low %vm190_vm4, %vm189_vm3 }
  0x99   :  { %v162_v53 = vpop.permute.xlu1 %161  ;;  %v159_v54 = vpop.permute.xlu0 %158 }
  0x9a   :  { %vm194_vm9 = vcmp.eq.s32.totalorder %v162_v53, %v122_v43  ;;  %vm193_vm10 = vcmp.eq.s32.totalorder %v159_v54, %v122_v43 }
  0x9b   :  { %vm1752_vm11 = vmpackc.low %vm194_vm9, %vm193_vm10  ;;  %vm201_vm9 = vcmp.eq.s32.totalorder %v183_v2, %v122_v43 }
  0xa1   :  { %v168_v56 = vpop.permute.xlu0 %167  ;;  %v171_v60 = vpop.permute.xlu1 %170 }
  0xa2   :  { %vm196_vm13 = vcmp.eq.s32.totalorder %v168_v56, %v122_v43  ;;  %vm197_vm0 = vcmp.eq.s32.totalorder %v171_v60, %v122_v43 }
  0xa3   :  { %vm1759_vm14 = vmpackc.low %vm196_vm13, %vm195_vm12 }
  0xa4   :  { %1309 = vmatmul.msk.bf16.gmra.mxu0 %vm1738_vm5, %v1541_v46  ;;  %vm1766_vm1 = vmpackc.low %vm198_vm15, %vm197_vm0 }
  0xa9   :  { %v180_v62 = vpop.permute.xlu1 %179  ;;  %v177_v63 = vpop.permute.xlu0 %176 }
  0xaa   :  { %vm200_vm3 = vcmp.eq.s32.totalorder %v180_v62, %v122_v43  ;;  %vm199_vm4 = vcmp.eq.s32.totalorder %v177_v63, %v122_v43  ;;  %v326_v62 = vld [vmem:[%s2447_s1 + $0x40] sm:$0xff] }
  0xab   :  { %vm1773_vm6 = vmpackc.low %vm200_vm3, %vm199_vm4 }
  0xb1   :  { %v186_v1 = vpop.permute.xlu0 %185 }
  0xb2   :  { %vm202_vm7 = vcmp.eq.s32.totalorder %v186_v1, %v122_v43 }
  0xb3   :  { %vm1780_vm10 = vmpackc.low %vm202_vm7, %vm201_vm9 }
  0xb4   :  { %1311 = vmatmul.msk.bf16.gmra.mxu0 %vm1745_vm8, %v1541_v46 }
  0xc4   :  { %1313 = vmatmul.msk.bf16.gmra.mxu0 %vm1752_vm11, %v1541_v46 }
  0xd4   :  { %1315 = vmatmul.msk.bf16.gmra.mxu0 %vm1759_vm14, %v1541_v46 }
  0xe4   :  { %1317 = vmatmul.msk.bf16.gmra.mxu0 %vm1766_vm1, %v1541_v46 }
  0xf4   :  { %1319 = vmatmul.msk.bf16.gmra.mxu0 %vm1773_vm6, %v1541_v46 }
 0x104   :  { %1321 = vmatmul.msk.bf16.gmra.mxu0 %vm1780_vm10, %v1541_v46 }
 0x111   :  { %v1787_v4 = vpop.f32.mrf.mxu0 }
 0x119   :  { %v1789_v5 = vpop.f32.mrf.mxu0 }
 0x121   :  { %v356_v6 = vpop.f32.mrf.mxu0 }
 0x129   :  { %v358_v9 = vpop.f32.mrf.mxu0 }
 0x131   :  { %v361_v12 = vpop.f32.mrf.mxu0 }
 0x139   :  { %v363_v13 = vpop.f32.mrf.mxu0 }
 0x141   :  { %v366_v14 = vpop.f32.mrf.mxu0 }
 0x149   :  { %v368_v17 = vpop.f32.mrf.mxu0 }
 0x151   :  { %v371_v18 = vpop.f32.mrf.mxu0 }
 0x159   :  { %v373_v21 = vpop.f32.mrf.mxu0 }
 0x15a   :  { %v374_v63 = vadd.f32 %v373_v21, %v327_v57  ;;  %v323_v21 = vld [vmem:[%s2447_s1 + $0x28] sm:$0xff] }
 0x161   :  { %v376_v22 = vpop.f32.mrf.mxu0 }
 0x162   :  { %v377_v59 = vadd.f32 %v376_v22, %v328_v51  ;;  %v324_v22 = vld [vmem:[%s2447_s1 + $0x30] sm:$0xff] }
 0x169   :  { %v378_v23 = vpop.f32.mrf.mxu0 }
 0x16a   :  { %v379_v53 = vadd.f32 %v378_v23, %v329_v44  ;;  %v325_v23 = vld [vmem:[%s2447_s1 + $0x38] sm:$0xff] }
 0x16c   :  { %v402_v1 = vmax.f32 %v379_v53, 0.0 }
 0x171   :  { %v381_v26 = vpop.f32.mrf.mxu0 }
 0x172   :  { %v382_v47 = vadd.f32 %v381_v26, %v330_v37  ;;  %v372_v26 = vadd.f32 %v371_v18, %v326_v62  ;;  %v322_v18 = vld [vmem:[%s2447_s1 + $0x20] sm:$0xff]  ;;  %v364_v37 = vadd.f32 %v363_v13, %v323_v21  ;;  %v319_v13 = vld [vmem:[%s2447_s1 + $0x8] sm:$0xff]  ;;  %v971_v21 = vld [vmem:[#allocation7 + $0xb8] sm:$0xff] }
 0x174   :  { %v403_v60 = vmax.f32 %v382_v47, 0.0 }
 0x179   :  { %v383_v27 = vpop.f32.mrf.mxu0 }
 0x17a   :  { %v384_v41 = vadd.f32 %v383_v27, %v331_v30  ;;  %v401_v27 = vmax.f32 %v377_v59, 0.0 }
 0x17c   :  { %v404_v54 = vmax.f32 %v384_v41, 0.0  ;;  %v412_v30 = vpack.c.bf16 %v402_v1, %v401_v27 }
 0x17e   :  { %v413_v2 = vpack.c.bf16 %v404_v54, %v403_v60  ;;  %v1840_v54 = vshrl.u32 %v121_v42, 7 }
 0x180   :  { %v245_v62 = vadd.s32 8, %v1840_v54  ;;  %v248_v27 = vadd.s32 32, %v1840_v54 }
 0x181   :  { %v386_v28 = vpop.f32.mrf.mxu0 }
 0x182   :  { %v387_v34 = vadd.f32 %v386_v28, %v332_v29  ;;  %v369_v28 = vadd.f32 %v368_v17, %v325_v23  ;;  %v400_v29 = vmax.f32 %v374_v63, 0.0  ;;  %v321_v17 = vld [vmem:[%s2447_s1 + $0x18] sm:$0xff]  ;;  %v247_v23 = vadd.s32 24, %v1840_v54 }
 0x183   :  { %v359_v47 = vadd.f32 %v358_v9, %v321_v17  ;;  %v511_v17 = vld [vmem:[#allocation7 + $0x60] sm:$0xff] }
 0x184   :  { %v405_v48 = vmax.f32 %v387_v34, 0.0  ;;  %v399_v34 = vmax.f32 %v372_v26, 0.0  ;;  %v975_v26 = vld [vmem:[#allocation7 + $0xd8] sm:$0xff] }
 0x185   :  { %v394_v57 = vmax.f32 %v359_v47, 0.0  ;;  %v509_v47 = vld [vmem:[#allocation7 + $0x50] sm:$0xff] }
 0x186   :  { %v411_v41 = vpack.c.bf16 %v400_v29, %v399_v34  ;;  %v250_v29 = vadd.s32 48, %v1840_v54  ;;  %v253_v34 = vadd.s32 72, %v1840_v54 }
 0x189   :  { %v388_v40 = vpop.f32.mrf.mxu0 }
 0x18a   :  { %v389_v43 = vadd.f32 %v388_v40, %v333_v31  ;;  %v367_v31 = vadd.f32 %v366_v14, %v324_v22  ;;  %v398_v40 = vmax.f32 %v369_v28, 0.0  ;;  %v320_v14 = vld [vmem:[%s2447_s1 + $0x10] sm:$0xff]  ;;  %v249_v22 = vadd.s32 40, %v1840_v54 }
 0x18b   :  { %v357_v51 = vadd.f32 %v356_v6, %v320_v14  ;;  %v1848_v6 = vld [vmem:[%s2449_s3] ss:$0 sm:$0xff]  ;;  %v2486_v28 = vmov 0  ;;  %v510_v14 = vld [vmem:[#allocation7 + $0x58] sm:$0xff]  ;;  %s464_s3 = sld [smem:[#allocation6]] }
 0x18c   :  { %v406_v50 = vmax.f32 %v389_v43, 0.0  ;;  %v362_v43 = vadd.f32 %v361_v12, %v322_v18  ;;  %v397_v44 = vmax.f32 %v367_v31, 0.0  ;;  %v318_v12 = vld [vmem:[%s2447_s1] sm:$0xff]  ;;  %vm262_vm12 = vcmp.eq.s32.totalorder %v1848_v6, %v1840_v54 }
 0x18d   :  { %v352_v59 = vadd.f32 %v1787_v4, %v318_v12  ;;  %v393_v60 = vmax.f32 %v357_v51, 0.0  ;;  %vm263_vm13 = vcmp.eq.s32.totalorder %v1848_v6, %v245_v62  ;;  %vm265_vm3 = vcmp.eq.s32.totalorder %v1848_v6, %v247_v23  ;;  %v506_v51 = vld [vmem:[#allocation7 + $0x38] sm:$0xff]  ;;  %v504_v12 = vld [vmem:[#allocation7 + $0x28] sm:$0xff] }
 0x18e   :  { %v414_v56 = vpack.c.bf16 %v406_v50, %v405_v48  ;;  %v396_v48 = vmax.f32 %v364_v37, 0.0  ;;  %v410_v50 = vpack.c.bf16 %v398_v40, %v397_v44  ;;  %v395_v53 = vmax.f32 %v362_v43, 0.0  ;;  %vm1853_vm15 = vmpackc.low %vm263_vm13, %vm262_vm12  ;;  %v514_v37 = vld [vmem:[#allocation7 + $0x78] sm:$0xff]  ;;  %v513_v40 = vld [vmem:[#allocation7 + $0x70] sm:$0xff] }
 0x18f   :  { %v408_v1 = vpack.c.bf16 %v394_v57, %v393_v60  ;;  %vm266_vm7 = vcmp.eq.s32.totalorder %v1848_v6, %v248_v27  ;;  %vm267_vm9 = vcmp.eq.s32.totalorder %v1848_v6, %v249_v22  ;;  %vm268_vm13 = vcmp.eq.s32.totalorder %v1848_v6, %v250_v29  ;;  %519 = vmatpush.msra.mxu2 %v514_v37  ;;  %v501_v60 = vld [vmem:[#allocation7 + $0x10] sm:$0xff]  ;;  %v500_v62 = vld [vmem:[#allocation7 + $0x8] sm:$0xff] }
 0x190   :  { %415 = vmatpush.bf16.msra.mxu1 %v414_v56  ;;  %v354_v56 = vadd.f32 %v1789_v5, %v319_v13  ;;  %v409_v9 = vpack.c.bf16 %v396_v48, %v395_v53  ;;  %v246_v5 = vadd.s32 16, %v1840_v54  ;;  %vm1875_vm12 = vmpackc.low %vm267_vm9, %vm266_vm7  ;;  %v252_v31 = vadd.s32 64, %v1840_v54  ;;  %v508_v48 = vld [vmem:[#allocation7 + $0x48] sm:$0xff]  ;;  %v505_v53 = vld [vmem:[#allocation7 + $0x30] sm:$0xff] }
 0x191   :  { %v2487_v28 = vsel %vm1875_vm12, 4294967295, %v2486_v28  ;;  %vm271_vm9 = vcmp.eq.s32.totalorder %v1848_v6, %v253_v34  ;;  %v2490_v18 = vmov 0  ;;  %520 = vmatpush.msra.mxu2 %v513_v40  ;;  %v254_v43 = vadd.s32 80, %v1840_v54  ;;  %s465_s15 = sadd.f32 1.0, %s464_s3  ;;  %v977_v4 = vld [vmem:[#allocation7 + $0xe8] sm:$0xff] }
 0x192   :  { %v392_v63 = vmax.f32 %v354_v56, 0.0  ;;  %vm264_vm0 = vcmp.eq.s32.totalorder %v1848_v6, %v246_v5  ;;  %vm270_vm7 = vcmp.eq.s32.totalorder %v1848_v6, %v252_v31  ;;  %v255_v44 = vadd.s32 88, %v1840_v54  ;;  %v503_v56 = vld [vmem:[#allocation7 + $0x20] sm:$0xff] }
 0x193   :  { %vm1864_vm4 = vmpackc.low %vm265_vm3, %vm264_vm0  ;;  %v2492_v13 = vmov 0  ;;  %v256_v57 = vadd.s32 96, %v1840_v54  ;;  %v1937_v23 = vstv %s465_s15 }
 0x194   :  { %416 = vmatpush.bf16.msra.mxu1 %v413_v2  ;;  %v391_v2 = vmax.f32 %v352_v59, 0.0  ;;  %v502_v59 = vld [vmem:[#allocation7 + $0x18] sm:$0xff]  ;;  %v467_v27 = vmul.f32 %v1937_v23, %v1724_v38  ;;  %v469_v31 = vmul.f32 %v1937_v23, %v1718_v35  ;;  %v470_v40 = vmul.f32 %v1937_v23, %v1720_v36 }
 0x196   :  { %v407_v42 = vpack.c.bf16 %v392_v63, %v391_v2  ;;  %v258_v2 = vadd.s32 112, %v1840_v54 }
 0x198   :  { %417 = vmatpush.bf16.msra.mxu1 %v412_v30  ;;  %v251_v30 = vadd.s32 56, %v1840_v54 }
 0x19a   :  { %vm269_vm0 = vcmp.eq.s32.totalorder %v1848_v6, %v251_v30 }
 0x19b   :  { %vm1886_vm3 = vmpackc.low %vm269_vm0, %vm268_vm13  ;;  %vm272_vm13 = vcmp.eq.s32.totalorder %v1848_v6, %v254_v43  ;;  %vm273_vm0 = vcmp.eq.s32.totalorder %v1848_v6, %v255_v44  ;;  %v472_v44 = vmul.f32 %v1937_v23, %v1714_v33 }
 0x19c   :  { %418 = vmatpush.bf16.msra.mxu1 %v411_v41  ;;  %v512_v41 = vld [vmem:[#allocation7 + $0x68] sm:$0xff] }
 0x19d   :  { %521 = vmatpush.msra.mxu2 %v512_v41 }
 0x19f   :  { %522 = vmatpush.msra.mxu2 %v511_v17  ;;  %v471_v17 = vmul.f32 %v1937_v23, %v1712_v32 }
 0x1a0   :  { %419 = vmatpush.bf16.msra.mxu1 %v410_v50  ;;  %v507_v50 = vld [vmem:[#allocation7 + $0x40] sm:$0xff] }
 0x1a1   :  { %523 = vmatpush.msra.mxu2 %v510_v14 }
 0x1a3   :  { %524 = vmatpush.msra.mxu2 %v509_v47  ;;  %v473_v47 = vmul.f32 %v1937_v23, %v1691_v24 }
 0x1a4   :  { %420 = vmatpush.bf16.msra.mxu1 %v409_v9  ;;  %v257_v9 = vadd.s32 104, %v1840_v54 }
 0x1a5   :  { %525 = vmatpush.msra.mxu2 %v508_v48 }
 0x1a7   :  { %526 = vmatpush.msra.mxu2 %v507_v50  ;;  %v474_v50 = vmul.f32 %v1937_v23, %v1693_v25 }
 0x1a8   :  { %421 = vmatpush.bf16.msra.mxu1 %v408_v1  ;;  %v499_v1 = vld [vmem:[#allocation7] sm:$0xff] }
 0x1a9   :  { %527 = vmatpush.msra.mxu2 %v506_v51 }
 0x1ab   :  { %528 = vmatpush.msra.mxu2 %v505_v53  ;;  %v475_v53 = vmul.f32 %v1937_v23, %v1679_v19  ;;  %v653_v19 = vld [vmem:[#allocation9 + $0x68] sm:$0xff] }
 0x1ac   :  { %422 = vmatpush.bf16.msra.mxu1 %v407_v42  ;;  %v259_v42 = vadd.s32 120, %v1840_v54 }
 0x1ad   :  { %529 = vmatpush.msra.mxu2 %v504_v12 }
 0x1af   :  { %1323 = vmatmul.msk.bf16.vlgmr.msra.gmra.mxu1 %vm1853_vm15, %v1541_v46  ;;  %530 = vmatpush.msra.mxu2 %v503_v56  ;;  %v476_v56 = vmul.f32 %v1937_v23, %v1681_v20  ;;  %v651_v20 = vld [vmem:[#allocation9 + $0x58] sm:$0xff] }
 0x1b1   :  { %531 = vmatpush.msra.mxu2 %v502_v59  ;;  %v655_v59 = vld [vmem:[#allocation9 + $0x78] sm:$0xff] }
 0x1b2   :  { %660 = vmatpush.msra.mxu3 %v655_v59 }
 0x1b3   :  { %532 = vmatpush.msra.mxu2 %v501_v60 }
 0x1b5   :  { %533 = vmatpush.msra.mxu2 %v500_v62  ;;  %v654_v62 = vld [vmem:[#allocation9 + $0x70] sm:$0xff] }
 0x1b6   :  { %661 = vmatpush.msra.mxu3 %v654_v62 }
 0x1b7   :  { %534 = vmatpush.msra.mxu2 %v499_v1  ;;  %v652_v1 = vld [vmem:[#allocation9 + $0x60] sm:$0xff] }
 0x1b8   :  { %662 = vmatpush.msra.mxu3 %v653_v19 }
 0x1ba   :  { %663 = vmatpush.msra.mxu3 %v652_v1 }
 0x1bc   :  { %664 = vmatpush.msra.mxu3 %v651_v20 }
 0x1bf   :  { %1325 = vmatmul.msk.bf16.gmra.mxu1 %vm1864_vm4, %v1541_v46 }
 0x1cf   :  { %1327 = vmatmul.msk.bf16.gmra.mxu1 %vm1875_vm12, %v1541_v46  ;;  %vm1897_vm12 = vmpackc.low %vm271_vm9, %vm270_vm7  ;;  %vm274_vm9 = vcmp.eq.s32.totalorder %v1848_v6, %v256_v57 }
 0x1d0   :  { %v2491_v18 = vsel %vm1897_vm12, 4294967295, %v2490_v18  ;;  %vm1908_vm7 = vmpackc.low %vm273_vm0, %vm272_vm13  ;;  %vm275_vm13 = vcmp.eq.s32.totalorder %v1848_v6, %v257_v9  ;;  %v477_v9 = vmul.f32 %v1937_v23, %v1670_v15  ;;  %v649_v15 = vld [vmem:[#allocation9 + $0x48] sm:$0xff] }
 0x1d1   :  { %v2493_v13 = vsel %vm1908_vm7, 4294967295, %v2492_v13  ;;  %vm1919_vm0 = vmpackc.low %vm275_vm13, %vm274_vm9 }
 0x1df   :  { %1329 = vmatmul.msk.bf16.gmra.mxu1 %vm1886_vm3, %v1541_v46 }
 0x1ef   :  { %1331 = vmatmul.msk.bf16.gmra.mxu1 %vm1897_vm12, %v1541_v46  ;;  %vm277_vm12 = vcmp.eq.s32.totalorder %v1848_v6, %v259_v42 }
 0x1ff   :  { %1333 = vmatmul.msk.bf16.gmra.mxu1 %vm1908_vm7, %v1541_v46  ;;  %vm276_vm7 = vcmp.eq.s32.totalorder %v1848_v6, %v258_v2  ;;  %v468_v6 = vmul.f32 %v1937_v23, %v1726_v39  ;;  %v478_v2 = vmul.f32 %v1937_v23, %v1672_v16 }
 0x200   :  { %vm1930_vm9 = vmpackc.low %vm277_vm12, %vm276_vm7 }
 0x20f   :  { %1335 = vmatmul.msk.bf16.gmra.mxu1 %vm1919_vm0, %v1541_v46 }
 0x21f   :  { %1337 = vmatmul.msk.bf16.gmra.mxu1 %vm1930_vm9, %v1541_v46 }
 0x22c   :  { %v424_v54 = vpop.f32.mrf.mxu1 }
 0x22d   :  { %v483_v22 = vadd.f32 %v467_v27, %v424_v54  ;;  %v650_v54 = vld [vmem:[#allocation9 + $0x50] sm:$0xff] }
 0x22e   :  { %665 = vmatpush.msra.mxu3 %v650_v54 }
 0x22f   :  { %535 = vmatmul.f32.vlgmr.msra.gmra.mxu2 %v483_v22  ;;  %v648_v22 = vld [vmem:[#allocation9 + $0x40] sm:$0xff] }
 0x230   :  { %666 = vmatpush.msra.mxu3 %v649_v15 }
 0x232   :  { %667 = vmatpush.msra.mxu3 %v648_v22 }
 0x234   :  { %v426_v29 = vpop.f32.mrf.mxu1 }
 0x235   :  { %v484_v30 = vadd.f32 %v468_v6, %v426_v29  ;;  %v479_v6 = vmul.f32 %v1937_v23, %v1658_v10  ;;  %v647_v29 = vld [vmem:[#allocation9 + $0x38] sm:$0xff]  ;;  %v642_v10 = vld [vmem:[#allocation9 + $0x10] sm:$0xff] }
 0x236   :  { %668 = vmatpush.msra.mxu3 %v647_v29 }
 0x237   :  { %538 = vmatmul.f32.gmra.mxu2 %v484_v30  ;;  %v646_v30 = vld [vmem:[#allocation9 + $0x30] sm:$0xff] }
 0x238   :  { %669 = vmatpush.msra.mxu3 %v646_v30 }
 0x23c   :  { %v429_v34 = vpop.f32.mrf.mxu1 }
 0x23d   :  { %v485_v37 = vadd.f32 %v469_v31, %v429_v34  ;;  %v645_v34 = vld [vmem:[#allocation9 + $0x28] sm:$0xff] }
 0x23e   :  { %670 = vmatpush.msra.mxu3 %v645_v34 }
 0x23f   :  { %541 = vmatmul.f32.gmra.mxu2 %v485_v37  ;;  %v480_v37 = vmul.f32 %v1937_v23, %v1660_v11  ;;  %v482_v11 = vmul.f32 %v1937_v23, %v1654_v8  ;;  %v1985_v8 = vld [vmem:[%s2454_s8] ss:$0 sm:$0xff] }
 0x244   :  { %v431_v41 = vpop.f32.mrf.mxu1 }
 0x245   :  { %v486_v38 = vadd.f32 %v470_v40, %v431_v41  ;;  %v644_v40 = vld [vmem:[#allocation9 + $0x20] sm:$0xff]  ;;  %v643_v41 = vld [vmem:[#allocation9 + $0x18] sm:$0xff] }
 0x246   :  { %671 = vmatpush.msra.mxu3 %v644_v40 }
 0x247   :  { %544 = vmatmul.f32.gmra.mxu2 %v486_v38 }
 0x248   :  { %672 = vmatpush.msra.mxu3 %v643_v41 }
 0x24a   :  { %673 = vmatpush.msra.mxu3 %v642_v10 }
 0x24c   :  { %v434_v43 = vpop.f32.mrf.mxu1 }
 0x24d   :  { %v487_v39 = vadd.f32 %v471_v17, %v434_v43  ;;  %v641_v43 = vld [vmem:[#allocation9 + $0x8] sm:$0xff] }
 0x24e   :  { %674 = vmatpush.msra.mxu3 %v641_v43 }
 0x24f   :  { %547 = vmatmul.f32.gmra.mxu2 %v487_v39  ;;  %v481_v39 = vmul.f32 %v1937_v23, %v1652_v7  ;;  %v1979_v7 = vld [vmem:[%s2453_s7] ss:$0 sm:$0xff] }
 0x254   :  { %v436_v14 = vpop.f32.mrf.mxu1 }
 0x255   :  { %v488_v35 = vadd.f32 %v472_v44, %v436_v14  ;;  %v640_v44 = vld [vmem:[#allocation9] sm:$0xff] }
 0x256   :  { %675 = vmatpush.msra.mxu3 %v640_v44 }
 0x257   :  { %550 = vmatmul.f32.gmra.mxu2 %v488_v35 }
 0x25c   :  { %v439_v48 = vpop.f32.mrf.mxu1 }
 0x25d   :  { %v489_v36 = vadd.f32 %v473_v47, %v439_v48 }
 0x25f   :  { %553 = vmatmul.f32.gmra.mxu2 %v489_v36  ;;  %v1974_v36 = vld [vmem:[%s2452_s6] ss:$0 sm:$0xff] }
 0x264   :  { %v441_v51 = vpop.f32.mrf.mxu1 }
 0x265   :  { %v490_v32 = vadd.f32 %v474_v50, %v441_v51 }
 0x267   :  { %556 = vmatmul.f32.gmra.mxu2 %v490_v32 }
 0x26c   :  { %v444_v12 = vpop.f32.mrf.mxu1 }
 0x26d   :  { %v491_v33 = vadd.f32 %v475_v53, %v444_v12 }
 0x26f   :  { %559 = vmatmul.f32.gmra.mxu2 %v491_v33 }
 0x274   :  { %v446_v57 = vpop.f32.mrf.mxu1 }
 0x275   :  { %v492_v24 = vadd.f32 %v476_v56, %v446_v57 }
 0x277   :  { %562 = vmatmul.f32.gmra.mxu2 %v492_v24 }
 0x27c   :  { %v449_v25 = vpop.f32.mrf.mxu1 }
 0x27d   :  { %v493_v60 = vadd.f32 %v477_v9, %v449_v25 }
 0x27f   :  { %565 = vmatmul.f32.gmra.mxu2 %v493_v60 }
 0x284   :  { %v451_v42 = vpop.f32.mrf.mxu1 }
 0x285   :  { %v494_v27 = vadd.f32 %v478_v2, %v451_v42 }
 0x287   :  { %568 = vmatmul.f32.gmra.mxu2 %v494_v27 }
 0x28c   :  { %v454_v31 = vpop.f32.mrf.mxu1 }
 0x28d   :  { %v495_v16 = vadd.f32 %v479_v6, %v454_v31 }
 0x28f   :  { %571 = vmatmul.f32.gmra.mxu2 %v495_v16 }
 0x294   :  { %v456_v38 = vpop.f32.mrf.mxu1 }
 0x295   :  { %v496_v17 = vadd.f32 %v480_v37, %v456_v38 }
 0x297   :  { %574 = vmatmul.f32.gmra.mxu2 %v496_v17 }
 0x29c   :  { %v459_v14 = vpop.f32.mrf.mxu1 }
 0x29d   :  { %v497_v35 = vadd.f32 %v481_v39, %v459_v14 }
 0x29f   :  { %577 = vmatmul.f32.gmra.mxu2 %v497_v35 }
 0x2a4   :  { %v461_v47 = vpop.f32.mrf.mxu1 }
 0x2a5   :  { %v498_v48 = vadd.f32 %v482_v11, %v461_v47 }
 0x2a7   :  { %580 = vmatmul.f32.gmra.mxu2 %v498_v48 }
 0x2b2   :  { %v536_v50 = vpop.f32.mrf.mxu2 }
 0x2b3   :  { %v537_v51 = vadd.f32 %v1974_v36, %v536_v50 }
 0x2b5   :  { %v588_v23 = vmul.f32 %v1979_v7, %v537_v51 }
 0x2b7   :  { %v608_v32 = vadd.f32 %v1985_v8, %v588_v23 }
 0x2b9   :  { %v624_v53 = vmax.f32 %v608_v32, 0.0 }
 0x2ba   :  { %v539_v12 = vpop.f32.mrf.mxu2 }
 0x2bb   :  { %v540_v33 = vadd.f32 %v1974_v36, %v539_v12  ;;  %676 = vmatmul.f32.vlgmr.msra.gmra.mxu3 %v624_v53 }
 0x2bd   :  { %v589_v56 = vmul.f32 %v1979_v7, %v540_v33 }
 0x2bf   :  { %v609_v57 = vadd.f32 %v1985_v8, %v589_v56 }
 0x2c1   :  { %v625_v24 = vmax.f32 %v609_v57, 0.0 }
 0x2c2   :  { %v542_v9 = vpop.f32.mrf.mxu2 }
 0x2c3   :  { %v543_v59 = vadd.f32 %v1974_v36, %v542_v9  ;;  %679 = vmatmul.f32.gmra.mxu3 %v625_v24 }
 0x2c5   :  { %v590_v25 = vmul.f32 %v1979_v7, %v543_v59 }
 0x2c7   :  { %v610_v60 = vadd.f32 %v1985_v8, %v590_v25 }
 0x2c9   :  { %v626_v62 = vmax.f32 %v610_v60, 0.0 }
 0x2ca   :  { %v545_v19 = vpop.f32.mrf.mxu2 }
 0x2cb   :  { %v546_v1 = vadd.f32 %v1974_v36, %v545_v19  ;;  %682 = vmatmul.f32.gmra.mxu3 %v626_v62 }
 0x2cd   :  { %v591_v2 = vmul.f32 %v1979_v7, %v546_v1 }
 0x2cf   :  { %v611_v20 = vadd.f32 %v1985_v8, %v591_v2 }
 0x2d1   :  { %v627_v42 = vmax.f32 %v611_v20, 0.0 }
 0x2d2   :  { %v548_v27 = vpop.f32.mrf.mxu2 }
 0x2d3   :  { %v549_v54 = vadd.f32 %v1974_v36, %v548_v27  ;;  %685 = vmatmul.f32.gmra.mxu3 %v627_v42 }
 0x2d5   :  { %v592_v15 = vmul.f32 %v1979_v7, %v549_v54 }
 0x2d7   :  { %v612_v22 = vadd.f32 %v1985_v8, %v592_v15 }
 0x2d9   :  { %v628_v6 = vmax.f32 %v612_v22, 0.0 }
 0x2da   :  { %v551_v29 = vpop.f32.mrf.mxu2 }
 0x2db   :  { %v552_v30 = vadd.f32 %v1974_v36, %v551_v29  ;;  %688 = vmatmul.f32.gmra.mxu3 %v628_v6 }
 0x2dd   :  { %v593_v31 = vmul.f32 %v1979_v7, %v552_v30 }
 0x2df   :  { %v613_v16 = vadd.f32 %v1985_v8, %v593_v31 }
 0x2e1   :  { %v629_v34 = vmax.f32 %v613_v16, 0.0 }
 0x2e2   :  { %v554_v37 = vpop.f32.mrf.mxu2 }
 0x2e3   :  { %v555_v40 = vadd.f32 %v1974_v36, %v554_v37  ;;  %691 = vmatmul.f32.gmra.mxu3 %v629_v34 }
 0x2e5   :  { %v594_v41 = vmul.f32 %v1979_v7, %v555_v40 }
 0x2e7   :  { %v614_v38 = vadd.f32 %v1985_v8, %v594_v41 }
 0x2e9   :  { %v630_v17 = vmax.f32 %v614_v38, 0.0 }
 0x2ea   :  { %v557_v10 = vpop.f32.mrf.mxu2 }
 0x2eb   :  { %v558_v43 = vadd.f32 %v1974_v36, %v557_v10  ;;  %694 = vmatmul.f32.gmra.mxu3 %v630_v17 }
 0x2ed   :  { %v595_v39 = vmul.f32 %v1979_v7, %v558_v43 }
 0x2ef   :  { %v615_v44 = vadd.f32 %v1985_v8, %v595_v39 }
 0x2f1   :  { %v631_v14 = vmax.f32 %v615_v44, 0.0 }
 0x2f2   :  { %v560_v35 = vpop.f32.mrf.mxu2 }
 0x2f3   :  { %v561_v11 = vadd.f32 %v1974_v36, %v560_v35  ;;  %697 = vmatmul.f32.gmra.mxu3 %v631_v14 }
 0x2f5   :  { %v596_v47 = vmul.f32 %v1979_v7, %v561_v11 }
 0x2f7   :  { %v616_v48 = vadd.f32 %v1985_v8, %v596_v47 }
 0x2f9   :  { %v632_v50 = vmax.f32 %v616_v48, 0.0 }
 0x2fa   :  { %v563_v51 = vpop.f32.mrf.mxu2 }
 0x2fb   :  { %v564_v23 = vadd.f32 %v1974_v36, %v563_v51  ;;  %700 = vmatmul.f32.gmra.mxu3 %v632_v50 }
 0x2fd   :  { %v597_v32 = vmul.f32 %v1979_v7, %v564_v23 }
 0x2ff   :  { %v617_v53 = vadd.f32 %v1985_v8, %v597_v32 }
 0x301   :  { %v633_v12 = vmax.f32 %v617_v53, 0.0 }
 0x302   :  { %v566_v33 = vpop.f32.mrf.mxu2 }
 0x303   :  { %v567_v56 = vadd.f32 %v1974_v36, %v566_v33  ;;  %703 = vmatmul.f32.gmra.mxu3 %v633_v12  ;;  %v2044_v33 = vld [vmem:[%s2457_s11] ss:$0 sm:$0xff] }
 0x305   :  { %v598_v57 = vmul.f32 %v1979_v7, %v567_v56 }
 0x307   :  { %v618_v24 = vadd.f32 %v1985_v8, %v598_v57 }
 0x309   :  { %v634_v9 = vmax.f32 %v618_v24, 0.0 }
 0x30a   :  { %v569_v59 = vpop.f32.mrf.mxu2 }
 0x30b   :  { %v570_v25 = vadd.f32 %v1974_v36, %v569_v59  ;;  %706 = vmatmul.f32.gmra.mxu3 %v634_v9 }
 0x30d   :  { %v599_v60 = vmul.f32 %v1979_v7, %v570_v25 }
 0x30f   :  { %v619_v62 = vadd.f32 %v1985_v8, %v599_v60 }
 0x311   :  { %v635_v19 = vmax.f32 %v619_v62, 0.0  ;;  %v2051_v62 = vld [vmem:[%s2458_s12] ss:$0 sm:$0xff] }
 0x312   :  { %v572_v1 = vpop.f32.mrf.mxu2 }
 0x313   :  { %v573_v2 = vadd.f32 %v1974_v36, %v572_v1  ;;  %709 = vmatmul.f32.gmra.mxu3 %v635_v19 }
 0x315   :  { %v600_v20 = vmul.f32 %v1979_v7, %v573_v2 }
 0x317   :  { %v620_v42 = vadd.f32 %v1985_v8, %v600_v20 }
 0x319   :  { %v636_v27 = vmax.f32 %v620_v42, 0.0 }
 0x31a   :  { %v575_v54 = vpop.f32.mrf.mxu2 }
 0x31b   :  { %v576_v15 = vadd.f32 %v1974_v36, %v575_v54  ;;  %712 = vmatmul.f32.gmra.mxu3 %v636_v27 }
 0x31d   :  { %v601_v22 = vmul.f32 %v1979_v7, %v576_v15 }
 0x31f   :  { %v621_v6 = vadd.f32 %v1985_v8, %v601_v22 }
 0x321   :  { %v637_v29 = vmax.f32 %v621_v6, 0.0 }
 0x322   :  { %v578_v30 = vpop.f32.mrf.mxu2 }
 0x323   :  { %v579_v31 = vadd.f32 %v1974_v36, %v578_v30  ;;  %715 = vmatmul.f32.gmra.mxu3 %v637_v29 }
 0x325   :  { %v602_v16 = vmul.f32 %v1979_v7, %v579_v31 }
 0x327   :  { %v622_v34 = vadd.f32 %v1985_v8, %v602_v16 }
 0x329   :  { %v638_v37 = vmax.f32 %v622_v34, 0.0 }
 0x32a   :  { %v581_v40 = vpop.f32.mrf.mxu2 }
 0x32b   :  { %v582_v41 = vadd.f32 %v1974_v36, %v581_v40  ;;  %718 = vmatmul.f32.gmra.mxu3 %v638_v37 }
 0x32d   :  { %v603_v38 = vmul.f32 %v1979_v7, %v582_v41 }
 0x32f   :  { %v623_v17 = vadd.f32 %v1985_v8, %v603_v38  ;;  %v1409_v8 = vld [vmem:[%s2456_s10] ss:$0 sm:$0xff] }
 0x331   :  { %v639_v10 = vmax.f32 %v623_v17, 0.0 }
 0x333   :  { %721 = vmatmul.f32.gmra.mxu3 %v639_v10 }
 0x33e   :  { %v2034_v43 = vpop.f32.mrf.mxu3 }
 0x346   :  { %v2036_v39 = vpop.f32.mrf.mxu3 }
 0x34e   :  { %v683_v44 = vpop.f32.mrf.mxu3 }
 0x356   :  { %v686_v14 = vpop.f32.mrf.mxu3 }
 0x35e   :  { %v689_v35 = vpop.f32.mrf.mxu3 }
 0x366   :  { %v692_v11 = vpop.f32.mrf.mxu3 }
 0x36e   :  { %v695_v47 = vpop.f32.mrf.mxu3 }
 0x36f   :  { %v696_v38 = vadd.f32 %v1409_v8, %v695_v47 }
 0x376   :  { %v698_v48 = vpop.f32.mrf.mxu3 }
 0x377   :  { %v699_v16 = vadd.f32 %v1409_v8, %v698_v48 }
 0x37e   :  { %v701_v50 = vpop.f32.mrf.mxu3 }
 0x37f   :  { %v702_v22 = vadd.f32 %v1409_v8, %v701_v50  ;;  %v693_v50 = vadd.f32 %v1409_v8, %v692_v11 }
 0x381   :  { %v737_v17 = vmul.f32 %v2044_v33, %v702_v22 }
 0x383   :  { %v2097_v11 = vadd.f32 %v2051_v62, %v737_v17 }
 0x386   :  { %v704_v51 = vpop.f32.mrf.mxu3 }
 0x387   :  { %v705_v42 = vadd.f32 %v1409_v8, %v704_v51  ;;  %v736_v51 = vmul.f32 %v2044_v33, %v699_v16 }
 0x389   :  { %v738_v34 = vmul.f32 %v2044_v33, %v705_v42  ;;  %v678_v42 = vadd.f32 %v1409_v8, %v2034_v43 }
 0x38b   :  { %v2092_v47 = vadd.f32 %v2051_v62, %v738_v34  ;;  %v729_v43 = vmul.f32 %v2044_v33, %v678_v42 }
 0x38e   :  { %v707_v36 = vpop.f32.mrf.mxu3 }
 0x38f   :  { %v708_v19 = vadd.f32 %v1409_v8, %v707_v36 }
 0x391   :  { %v739_v6 = vmul.f32 %v2044_v33, %v708_v19 }
 0x393   :  { %v2083_v48 = vadd.f32 %v2051_v62, %v739_v6 }
 0x396   :  { %v710_v23 = vpop.f32.mrf.mxu3 }
 0x397   :  { %v711_v59 = vadd.f32 %v1409_v8, %v710_v23 }
 0x399   :  { %v740_v27 = vmul.f32 %v2044_v33, %v711_v59 }
 0x39b   :  { %v2078_v41 = vadd.f32 %v2051_v62, %v740_v27 }
 0x39d   :  { %v776_v23 = vmax.f32 %v2078_v41, 0.0 }
 0x39e   :  { %v713_v32 = vpop.f32.mrf.mxu3 }
 0x39f   :  { %v714_v57 = vadd.f32 %v1409_v8, %v713_v32  ;;  %v690_v32 = vadd.f32 %v1409_v8, %v689_v35  ;;  %v2106_v35 = vadd.f32 %v2051_v62, %v736_v51 }
 0x3a1   :  { %v741_v1 = vmul.f32 %v2044_v33, %v714_v57  ;;  %v733_v59 = vmul.f32 %v2044_v33, %v690_v32 }
 0x3a3   :  { %v2069_v31 = vadd.f32 %v2051_v62, %v741_v1 }
 0x3a5   :  { %v777_v10 = vmax.f32 %v2069_v31, 0.0 }
 0x3a6   :  { %v716_v7 = vpop.f32.mrf.mxu3 }
 0x3a7   :  { %v717_v56 = vadd.f32 %v1409_v8, %v716_v7  ;;  %v735_v7 = vmul.f32 %v2044_v33, %v696_v38 }
 0x3a9   :  { %v742_v25 = vmul.f32 %v2044_v33, %v717_v56  ;;  %v734_v56 = vmul.f32 %v2044_v33, %v693_v50 }
 0x3ab   :  { %v2063_v15 = vadd.f32 %v2051_v62, %v742_v25  ;;  %v773_v25 = vmax.f32 %v2097_v11, 0.0 }
 0x3ad   :  { %v2465_v40 = vmax.f32 %v2063_v15, 0.0 }
 0x3ae   :  { %v719_v53 = vpop.f32.mrf.mxu3 }
 0x3af   :  { %v720_v12 = vadd.f32 %v1409_v8, %v719_v53  ;;  %v804_v36 = vpack.c.bf16 %v2465_v40, %v777_v10  ;;  %v775_v53 = vmax.f32 %v2083_v48, 0.0  ;;  %v1347_v40 = vld [vmem:[%s2447_s1 + $0xc8] sm:$0xff] }
 0x3b1   :  { %v743_v24 = vmul.f32 %v2044_v33, %v720_v12  ;;  %v687_v12 = vadd.f32 %v1409_v8, %v686_v14  ;;  %v803_v57 = vpack.c.bf16 %v776_v23, %v775_v53  ;;  %v2111_v14 = vadd.f32 %v2051_v62, %v735_v7 }
 0x3b3   :  { %v2056_v20 = vadd.f32 %v2051_v62, %v743_v24  ;;  %v774_v24 = vmax.f32 %v2092_v47, 0.0  ;;  %v732_v19 = vmul.f32 %v2044_v33, %v687_v12  ;;  %v771_v22 = vmax.f32 %v2111_v14, 0.0 }
 0x3b5   :  { %v2464_v29 = vmax.f32 %v2056_v20, 0.0  ;;  %v802_v1 = vpack.c.bf16 %v774_v24, %v773_v25 }
 0x3b6   :  { %v722_v9 = vpop.f32.mrf.mxu3 }
 0x3b7   :  { %v723_v60 = vadd.f32 %v1409_v8, %v722_v9  ;;  %v684_v9 = vadd.f32 %v1409_v8, %v683_v44  ;;  %v2121_v44 = vadd.f32 %v2051_v62, %v734_v56 }
 0x3b9   :  { %v744_v2 = vmul.f32 %v2044_v33, %v723_v60  ;;  %v681_v60 = vadd.f32 %v1409_v8, %v2036_v39  ;;  %v731_v27 = vmul.f32 %v2044_v33, %v684_v9  ;;  %v2127_v39 = vadd.f32 %v2051_v62, %v733_v59  ;;  %v1341_v59 = vld [vmem:[%s2447_s1 + $0x98] sm:$0xff] }
 0x3ba   :  { %v770_v34 = vmax.f32 %v2121_v44, 0.0 }
 0x3bb   :  { %v2060_v54 = vadd.f32 %v2051_v62, %v744_v2  ;;  %v772_v2 = vmax.f32 %v2106_v35, 0.0  ;;  %v730_v6 = vmul.f32 %v2044_v33, %v681_v60  ;;  %v769_v8 = vmax.f32 %v2127_v39, 0.0 }
 0x3bc   :  { %v2141_v38 = vadd.f32 %v2051_v62, %v731_v27  ;;  %v2153_v33 = vadd.f32 %v2051_v62, %v729_v43  ;;  %v1342_v43 = vld [vmem:[%s2447_s1 + $0xa0] sm:$0xff] }
 0x3bd   :  { %v2463_v30 = vmax.f32 %v2060_v54, 0.0  ;;  %v801_v16 = vpack.c.bf16 %v772_v2, %v771_v22  ;;  %v800_v17 = vpack.c.bf16 %v770_v34, %v769_v8  ;;  %v2149_v51 = vadd.f32 %v2051_v62, %v730_v6 }
 0x3be   :  { %v765_v12 = vmax.f32 %v2153_v33, 0.0 }
 0x3bf   :  { %v805_v37 = vpack.c.bf16 %v2463_v30, %v2464_v29  ;;  %v766_v7 = vmax.f32 %v2149_v51, 0.0  ;;  %v1348_v30 = vld [vmem:[%s2447_s1 + $0xd0] sm:$0xff] }
 0x3c1   :  { %806 = vmatpush.bf16.msrb.mxu0 %v805_v37  ;;  %v2136_v37 = vadd.f32 %v2051_v62, %v732_v19  ;;  %v798_v56 = vpack.c.bf16 %v766_v7, %v765_v12 }
 0x3c3   :  { %v768_v50 = vmax.f32 %v2136_v37, 0.0 }
 0x3c5   :  { %807 = vmatpush.bf16.msrb.mxu0 %v804_v36  ;;  %v767_v36 = vmax.f32 %v2141_v38, 0.0 }
 0x3c7   :  { %v799_v32 = vpack.c.bf16 %v768_v50, %v767_v36 }
 0x3c9   :  { %808 = vmatpush.bf16.msrb.mxu0 %v803_v57 }
 0x3cd   :  { %809 = vmatpush.bf16.msrb.mxu0 %v802_v1 }
 0x3d1   :  { %810 = vmatpush.bf16.msrb.mxu0 %v801_v16 }
 0x3d5   :  { %811 = vmatpush.bf16.msrb.mxu0 %v800_v17  ;;  %v1343_v17 = vld [vmem:[%s2447_s1 + $0xa8] sm:$0xff] }
 0x3d9   :  { %812 = vmatpush.bf16.msrb.mxu0 %v799_v32 }
 0x3dd   :  { %813 = vmatpush.bf16.msrb.mxu0 %v798_v56 }
 0x3e0   :  { %1355 = vmatmul.msk.bf16.vlgmr.msrb.gmra.mxu0 %vm1731_vm2, %v1541_v46  ;;  %vm2498_vm2 = vnez %v2487_v28  ;;  %v973_v28 = vld [vmem:[#allocation7 + $0xc8] sm:$0xff] }
 0x3f0   :  { %1357 = vmatmul.msk.bf16.gmra.mxu0 %vm1738_vm5, %v1541_v46  ;;  %vm2499_vm5 = vnez %v2491_v18  ;;  %v970_v18 = vld [vmem:[#allocation7 + $0xb0] sm:$0xff] }
 0x400   :  { %1359 = vmatmul.msk.bf16.gmra.mxu0 %vm1745_vm8, %v1541_v46  ;;  %vm2500_vm8 = vnez %v2493_v13 }
 0x410   :  { %1361 = vmatmul.msk.bf16.gmra.mxu0 %vm1752_vm11, %v1541_v46 }
 0x420   :  { %1363 = vmatmul.msk.bf16.gmra.mxu0 %vm1759_vm14, %v1541_v46 }
 0x430   :  { %1365 = vmatmul.msk.bf16.gmra.mxu0 %vm1766_vm1, %v1541_v46 }
 0x440   :  { %1367 = vmatmul.msk.bf16.gmra.mxu0 %vm1773_vm6, %v1541_v46 }
 0x450   :  { %1369 = vmatmul.msk.bf16.gmra.mxu0 %vm1780_vm10, %v1541_v46 }
 0x45d   :  { %v815_v45 = vpop.f32.mrf.mxu0 }
 0x45e   :  { %v816_v55 = vadd.f32 %v1338_v49, %v815_v45 }
 0x460   :  { %v855_v62 = vmax.f32 %v816_v55, 0.0 }
 0x465   :  { %v817_v58 = vpop.f32.mrf.mxu0 }
 0x466   :  { %v818_v61 = vadd.f32 %v1339_v52, %v817_v58 }
 0x468   :  { %v856_v57 = vmax.f32 %v818_v61, 0.0  ;;  %v1344_v61 = vld [vmem:[%s2447_s1 + $0xb0] sm:$0xff] }
 0x46a   :  { %v2195_v0 = vpack.c.bf16 %v856_v57, %v855_v62  ;;  %v1345_v62 = vld [vmem:[%s2447_s1 + $0xb8] sm:$0xff] }
 0x46d   :  { %v820_v9 = vpop.f32.mrf.mxu0 }
 0x46e   :  { %v821_v60 = vadd.f32 %v1340_v3, %v820_v9 }
 0x470   :  { %v857_v42 = vmax.f32 %v821_v60, 0.0 }
 0x475   :  { %v822_v19 = vpop.f32.mrf.mxu0 }
 0x476   :  { %v823_v1 = vadd.f32 %v1341_v59, %v822_v19 }
 0x478   :  { %v858_v27 = vmax.f32 %v823_v1, 0.0 }
 0x47a   :  { %v872_v6 = vpack.c.bf16 %v858_v27, %v857_v42 }
 0x47d   :  { %v825_v16 = vpop.f32.mrf.mxu0 }
 0x47e   :  { %v826_v32 = vadd.f32 %v1342_v43, %v825_v16 }
 0x480   :  { %v859_v49 = vmax.f32 %v826_v32, 0.0 }
 0x485   :  { %v827_v56 = vpop.f32.mrf.mxu0 }
 0x486   :  { %v828_v45 = vadd.f32 %v1343_v17, %v827_v56  ;;  %v1352_v56 = vld [vmem:[%s2447_s1 + $0xf0] sm:$0xff] }
 0x488   :  { %v860_v52 = vmax.f32 %v828_v45, 0.0  ;;  %v1351_v45 = vld [vmem:[%s2447_s1 + $0xe8] sm:$0xff] }
 0x48a   :  { %v873_v55 = vpack.c.bf16 %v860_v52, %v859_v49  ;;  %v1353_v49 = vld [vmem:[%s2447_s1 + $0xf8] sm:$0xff] }
 0x48d   :  { %v830_v58 = vpop.f32.mrf.mxu0 }
 0x48e   :  { %v831_v57 = vadd.f32 %v1344_v61, %v830_v58  ;;  %v1350_v58 = vld [vmem:[%s2447_s1 + $0xe0] sm:$0xff] }
 0x490   :  { %v861_v59 = vmax.f32 %v831_v57, 0.0 }
 0x495   :  { %v832_v9 = vpop.f32.mrf.mxu0 }
 0x496   :  { %v833_v3 = vadd.f32 %v1345_v62, %v832_v9  ;;  %v1349_v9 = vld [vmem:[%s2447_s1 + $0xd8] sm:$0xff] }
 0x498   :  { %v862_v60 = vmax.f32 %v833_v3, 0.0 }
 0x49a   :  { %v874_v19 = vpack.c.bf16 %v862_v60, %v861_v59 }
 0x49d   :  { %v835_v1 = vpop.f32.mrf.mxu0 }
 0x4a5   :  { %v837_v42 = vpop.f32.mrf.mxu0 }
 0x4ad   :  { %v840_v27 = vpop.f32.mrf.mxu0 }
 0x4b5   :  { %v842_v16 = vpop.f32.mrf.mxu0 }
 0x4b6   :  { %v843_v29 = vadd.f32 %v1349_v9, %v842_v16 }
 0x4bd   :  { %v845_v43 = vpop.f32.mrf.mxu0 }
 0x4be   :  { %v846_v3 = vadd.f32 %v1350_v58, %v845_v43  ;;  %v1346_v43 = vld [vmem:[%s2447_s1 + $0xc0] sm:$0xff]  ;;  %s1386_s1 = sld [smem:[#allocation6 + $0x1]] }
 0x4c4   :  { %s929_s20 = sadd.f32 1.0, %s1386_s1 }
 0x4c5   :  { %v847_v17 = vpop.f32.mrf.mxu0 }
 0x4c6   :  { %v848_v62 = vadd.f32 %v1351_v45, %v847_v17  ;;  %v841_v17 = vadd.f32 %v1348_v30, %v840_v27  ;;  %v867_v45 = vmax.f32 %v846_v3, 0.0  ;;  %v978_v30 = vld [vmem:[#allocation7 + $0xf0] sm:$0xff]  ;;  %v965_v27 = vld [vmem:[#allocation7 + $0x88] sm:$0xff]  ;;  %v964_v3 = vld [vmem:[#allocation7 + $0x80] sm:$0xff]  ;;  %v2264_v13 = vstv %s929_s20 }
 0x4c7   :  { %v932_v63 = vmul.f32 %v2264_v13, %v766_v7  ;;  %v934_v33 = vmul.f32 %v2264_v13, %v768_v50  ;;  %v935_v51 = vmul.f32 %v2264_v13, %v769_v8  ;;  %v936_v38 = vmul.f32 %v2264_v13, %v770_v34 }
 0x4c8   :  { %v937_v37 = vmul.f32 %v2264_v13, %v771_v22  ;;  %v938_v39 = vmul.f32 %v2264_v13, %v772_v2  ;;  %v939_v44 = vmul.f32 %v2264_v13, %v773_v25  ;;  %v940_v14 = vmul.f32 %v2264_v13, %v774_v24  ;;  %v1124_v2 = vld [vmem:[#allocation9 + $0xf8] sm:$0xff]  ;;  %v1122_v25 = vld [vmem:[#allocation9 + $0xe8] sm:$0xff] }
 0x4c9   :  { %v941_v35 = vmul.f32 %v2264_v13, %v775_v53  ;;  %1130 = vmatpush.msrb.mxu3 %v1124_v2  ;;  %v942_v47 = vmul.f32 %v2264_v13, %v776_v23  ;;  %v1120_v24 = vld [vmem:[#allocation9 + $0xd8] sm:$0xff]  ;;  %v1119_v53 = vld [vmem:[#allocation9 + $0xd0] sm:$0xff] }
 0x4cd   :  { %v850_v32 = vpop.f32.mrf.mxu0 }
 0x4ce   :  { %v851_v52 = vadd.f32 %v1352_v56, %v850_v32  ;;  %v868_v32 = vmax.f32 %v848_v62, 0.0 }
 0x4d0   :  { %v869_v59 = vmax.f32 %v851_v52, 0.0  ;;  %v866_v52 = vmax.f32 %v843_v29, 0.0  ;;  %v877_v58 = vpack.c.bf16 %v868_v32, %v867_v45  ;;  %v979_v29 = vld [vmem:[#allocation7 + $0xf8] sm:$0xff] }
 0x4d1   :  { %985 = vmatpush.msrb.mxu2 %v979_v29  ;;  %v1121_v29 = vld [vmem:[#allocation9 + $0xe0] sm:$0xff] }
 0x4d3   :  { %986 = vmatpush.msrb.mxu2 %v978_v30 }
 0x4d5   :  { %v852_v61 = vpop.f32.mrf.mxu0  ;;  %987 = vmatpush.msrb.mxu2 %v977_v4  ;;  %v1118_v4 = vld [vmem:[#allocation9 + $0xc8] sm:$0xff] }
 0x4d6   :  { %v853_v57 = vadd.f32 %v1353_v49, %v852_v61  ;;  %v838_v49 = vadd.f32 %v1347_v40, %v837_v42  ;;  %v836_v61 = vadd.f32 %v1346_v43, %v835_v1  ;;  %v976_v40 = vld [vmem:[#allocation7 + $0xe0] sm:$0xff]  ;;  %v967_v1 = vld [vmem:[#allocation7 + $0x98] sm:$0xff]  ;;  %v966_v42 = vld [vmem:[#allocation7 + $0x90] sm:$0xff] }
 0x4d7   :  { %988 = vmatpush.msrb.mxu2 %v976_v40  ;;  %v1117_v40 = vld [vmem:[#allocation9 + $0xc0] sm:$0xff] }
 0x4d8   :  { %v870_v60 = vmax.f32 %v853_v57, 0.0  ;;  %v865_v57 = vmax.f32 %v841_v17, 0.0  ;;  %v864_v16 = vmax.f32 %v838_v49, 0.0  ;;  %v863_v9 = vmax.f32 %v836_v61, 0.0 }
 0x4d9   :  { %989 = vmatpush.msrb.mxu2 %v975_v26  ;;  %v1116_v26 = vld [vmem:[#allocation9 + $0xb8] sm:$0xff] }
 0x4da   :  { %v878_v56 = vpack.c.bf16 %v870_v60, %v869_v59  ;;  %v876_v62 = vpack.c.bf16 %v866_v52, %v865_v57  ;;  %v875_v59 = vpack.c.bf16 %v864_v16, %v863_v9  ;;  %v931_v60 = vmul.f32 %v2264_v13, %v765_v12 }
 0x4dc   :  { %879 = vmatpush.bf16.msrb.mxu1 %v878_v56 }
 0x4e0   :  { %880 = vmatpush.bf16.msrb.mxu1 %v877_v58 }
 0x4e4   :  { %881 = vmatpush.bf16.msrb.mxu1 %v876_v62 }
 0x4e8   :  { %882 = vmatpush.bf16.msrb.mxu1 %v875_v59  ;;  %v1123_v59 = vld [vmem:[#allocation9 + $0xf0] sm:$0xff] }
 0x4e9   :  { %1131 = vmatpush.msrb.mxu3 %v1123_v59 }
 0x4eb   :  { %1132 = vmatpush.msrb.mxu3 %v1122_v25 }
 0x4ec   :  { %883 = vmatpush.bf16.msrb.mxu1 %v874_v19  ;;  %v968_v19 = vld [vmem:[#allocation7 + $0xa0] sm:$0xff] }
 0x4ed   :  { %1133 = vmatpush.msrb.mxu3 %v1121_v29 }
 0x4ef   :  { %1134 = vmatpush.msrb.mxu3 %v1120_v24 }
 0x4f0   :  { %884 = vmatpush.bf16.msrb.mxu1 %v873_v55  ;;  %v969_v55 = vld [vmem:[#allocation7 + $0xa8] sm:$0xff] }
 0x4f1   :  { %1135 = vmatpush.msrb.mxu3 %v1119_v53 }
 0x4f3   :  { %1136 = vmatpush.msrb.mxu3 %v1118_v4 }
 0x4f4   :  { %885 = vmatpush.bf16.msrb.mxu1 %v872_v6  ;;  %v972_v6 = vld [vmem:[#allocation7 + $0xc0] sm:$0xff] }
 0x4f5   :  { %1137 = vmatpush.msrb.mxu3 %v1117_v40 }
 0x4f7   :  { %1138 = vmatpush.msrb.mxu3 %v1116_v26 }
 0x4f8   :  { %886 = vmatpush.bf16.msrb.mxu1 %v2195_v0  ;;  %v974_v0 = vld [vmem:[#allocation7 + $0xd0] sm:$0xff] }
 0x4f9   :  { %990 = vmatpush.msrb.mxu2 %v974_v0  ;;  %v943_v0 = vmul.f32 %v2264_v13, %v777_v10  ;;  %v1110_v10 = vld [vmem:[#allocation9 + $0x88] sm:$0xff] }
 0x4fb   :  { %1371 = vmatmul.msk.bf16.vlgmr.msrb.gmra.mxu1 %vm1853_vm15, %v1541_v46  ;;  %991 = vmatpush.msrb.mxu2 %v973_v28  ;;  %v1115_v28 = vld [vmem:[#allocation9 + $0xb0] sm:$0xff] }
 0x4fc   :  { %1139 = vmatpush.msrb.mxu3 %v1115_v28 }
 0x4fd   :  { %992 = vmatpush.msrb.mxu2 %v972_v6  ;;  %v1114_v6 = vld [vmem:[#allocation9 + $0xa8] sm:$0xff] }
 0x4fe   :  { %1140 = vmatpush.msrb.mxu3 %v1114_v6 }
 0x4ff   :  { %993 = vmatpush.msrb.mxu2 %v971_v21  ;;  %v1113_v21 = vld [vmem:[#allocation9 + $0xa0] sm:$0xff] }
 0x500   :  { %1141 = vmatpush.msrb.mxu3 %v1113_v21 }
 0x501   :  { %994 = vmatpush.msrb.mxu2 %v970_v18  ;;  %v2501_v18 = vmax.f32 %v2063_v15, 0.0  ;;  %v2503_v15 = vmax.f32 %v2060_v54, 0.0  ;;  %v2328_v54 = vld [vmem:[%s2454_s8 + $0x1] ss:$0 sm:$0xff] }
 0x503   :  { %995 = vmatpush.msrb.mxu2 %v969_v55  ;;  %v944_v55 = vmul.f32 %v2264_v13, %v2501_v18 }
 0x505   :  { %996 = vmatpush.msrb.mxu2 %v968_v19  ;;  %v1112_v19 = vld [vmem:[#allocation9 + $0x98] sm:$0xff] }
 0x506   :  { %1142 = vmatpush.msrb.mxu3 %v1112_v19 }
 0x507   :  { %997 = vmatpush.msrb.mxu2 %v967_v1 }
 0x509   :  { %998 = vmatpush.msrb.mxu2 %v966_v42  ;;  %v1111_v42 = vld [vmem:[#allocation9 + $0x90] sm:$0xff] }
 0x50a   :  { %1143 = vmatpush.msrb.mxu3 %v1111_v42 }
 0x50b   :  { %1373 = vmatmul.msk.bf16.gmra.mxu1 %vm1864_vm4, %v1541_v46  ;;  %999 = vmatpush.msrb.mxu2 %v965_v27  ;;  %v1109_v27 = vld [vmem:[#allocation9 + $0x80] sm:$0xff] }
 0x50c   :  { %1144 = vmatpush.msrb.mxu3 %v1110_v10 }
 0x50d   :  { %1000 = vmatpush.msrb.mxu2 %v964_v3  ;;  %v2502_v3 = vmax.f32 %v2056_v20, 0.0  ;;  %v2322_v20 = vld [vmem:[%s2453_s7 + $0x1] ss:$0 sm:$0xff] }
 0x50e   :  { %1145 = vmatpush.msrb.mxu3 %v1109_v27 }
 0x51b   :  { %1375 = vmatmul.msk.bf16.gmra.mxu1 %vm2498_vm2, %v1541_v46 }
 0x52b   :  { %1377 = vmatmul.msk.bf16.gmra.mxu1 %vm1886_vm3, %v1541_v46 }
 0x53b   :  { %1379 = vmatmul.msk.bf16.gmra.mxu1 %vm2499_vm5, %v1541_v46 }
 0x54b   :  { %1381 = vmatmul.msk.bf16.gmra.mxu1 %vm2500_vm8, %v1541_v46 }
 0x55b   :  { %1383 = vmatmul.msk.bf16.gmra.mxu1 %vm1919_vm0, %v1541_v46 }
 0x56b   :  { %1385 = vmatmul.msk.bf16.gmra.mxu1 %vm1930_vm9, %v1541_v46  ;;  %v933_v46 = vmul.f32 %v2264_v13, %v767_v36 }
 0x578   :  { %v888_v32 = vpop.f32.mrf.mxu1 }
 0x579   :  { %v947_v56 = vadd.f32 %v931_v60, %v888_v32  ;;  %v945_v60 = vmul.f32 %v2264_v13, %v2502_v3 }
 0x57b   :  { %1001 = vmatmul.f32.vlgmr.msrb.gmra.mxu2 %v947_v56 }
 0x580   :  { %v890_v17 = vpop.f32.mrf.mxu1 }
 0x581   :  { %v948_v45 = vadd.f32 %v932_v63, %v890_v17  ;;  %v946_v63 = vmul.f32 %v2264_v13, %v2503_v15 }
 0x583   :  { %1004 = vmatmul.f32.gmra.mxu2 %v948_v45 }
 0x588   :  { %v893_v5 = vpop.f32.mrf.mxu1 }
 0x589   :  { %v949_v43 = vadd.f32 %v933_v46, %v893_v5  ;;  %v2317_v46 = vld [vmem:[%s2452_s6 + $0x1] ss:$0 sm:$0xff] }
 0x58b   :  { %1007 = vmatmul.f32.gmra.mxu2 %v949_v43 }
 0x590   :  { %v895_v12 = vpop.f32.mrf.mxu1 }
 0x591   :  { %v950_v49 = vadd.f32 %v934_v33, %v895_v12 }
 0x593   :  { %1010 = vmatmul.f32.gmra.mxu2 %v950_v49 }
 0x598   :  { %v898_v7 = vpop.f32.mrf.mxu1 }
 0x599   :  { %v951_v52 = vadd.f32 %v935_v51, %v898_v7 }
 0x59b   :  { %1013 = vmatmul.f32.gmra.mxu2 %v951_v52 }
 0x5a0   :  { %v900_v36 = vpop.f32.mrf.mxu1 }
 0x5a1   :  { %v952_v58 = vadd.f32 %v936_v38, %v900_v36 }
 0x5a3   :  { %1016 = vmatmul.f32.gmra.mxu2 %v952_v58 }
 0x5a8   :  { %v903_v50 = vpop.f32.mrf.mxu1 }
 0x5a9   :  { %v953_v61 = vadd.f32 %v937_v37, %v903_v50 }
 0x5ab   :  { %1019 = vmatmul.f32.gmra.mxu2 %v953_v61 }
 0x5b0   :  { %v905_v8 = vpop.f32.mrf.mxu1 }
 0x5b1   :  { %v954_v57 = vadd.f32 %v938_v39, %v905_v8 }
 0x5b3   :  { %1022 = vmatmul.f32.gmra.mxu2 %v954_v57 }
 0x5b8   :  { %v908_v34 = vpop.f32.mrf.mxu1 }
 0x5b9   :  { %v955_v16 = vadd.f32 %v939_v44, %v908_v34 }
 0x5bb   :  { %1025 = vmatmul.f32.gmra.mxu2 %v955_v16 }
 0x5c0   :  { %v910_v22 = vpop.f32.mrf.mxu1 }
 0x5c1   :  { %v956_v62 = vadd.f32 %v940_v14, %v910_v22 }
 0x5c3   :  { %1028 = vmatmul.f32.gmra.mxu2 %v956_v62 }
 0x5c8   :  { %v913_v9 = vpop.f32.mrf.mxu1 }
 0x5c9   :  { %v957_v11 = vadd.f32 %v941_v35, %v913_v9 }
 0x5cb   :  { %1031 = vmatmul.f32.gmra.mxu2 %v957_v11 }
 0x5d0   :  { %v915_v30 = vpop.f32.mrf.mxu1 }
 0x5d1   :  { %v958_v48 = vadd.f32 %v942_v47, %v915_v30 }
 0x5d3   :  { %1034 = vmatmul.f32.gmra.mxu2 %v958_v48 }
 0x5d8   :  { %v918_v41 = vpop.f32.mrf.mxu1 }
 0x5d9   :  { %v959_v23 = vadd.f32 %v943_v0, %v918_v41 }
 0x5db   :  { %1037 = vmatmul.f32.gmra.mxu2 %v959_v23 }
 0x5e0   :  { %v920_v1 = vpop.f32.mrf.mxu1 }
 0x5e1   :  { %v960_v31 = vadd.f32 %v944_v55, %v920_v1 }
 0x5e3   :  { %1040 = vmatmul.f32.gmra.mxu2 %v960_v31 }
 0x5e8   :  { %v923_v32 = vpop.f32.mrf.mxu1 }
 0x5e9   :  { %v961_v56 = vadd.f32 %v945_v60, %v923_v32 }
 0x5eb   :  { %1043 = vmatmul.f32.gmra.mxu2 %v961_v56 }
 0x5f0   :  { %v925_v17 = vpop.f32.mrf.mxu1 }
 0x5f1   :  { %v962_v45 = vadd.f32 %v946_v63, %v925_v17 }
 0x5f3   :  { %1046 = vmatmul.f32.gmra.mxu2 %v962_v45 }
 0x5fe   :  { %v1002_v5 = vpop.f32.mrf.mxu2 }
 0x5ff   :  { %v1003_v43 = vadd.f32 %v2317_v46, %v1002_v5 }
 0x601   :  { %v1055_v13 = vmul.f32 %v2322_v20, %v1003_v43 }
 0x603   :  { %v1076_v33 = vadd.f32 %v2328_v54, %v1055_v13 }
 0x605   :  { %v1092_v12 = vmax.f32 %v1076_v33, 0.0 }
 0x606   :  { %v1005_v49 = vpop.f32.mrf.mxu2 }
 0x607   :  { %v1006_v51 = vadd.f32 %v2317_v46, %v1005_v49  ;;  %1146 = vmatmul.f32.vlgmr.msrb.gmra.mxu3 %v1092_v12 }
 0x609   :  { %v1056_v7 = vmul.f32 %v2322_v20, %v1006_v51 }
 0x60b   :  { %v1077_v52 = vadd.f32 %v2328_v54, %v1056_v7 }
 0x60d   :  { %v1093_v38 = vmax.f32 %v1077_v52, 0.0 }
 0x60e   :  { %v1008_v36 = vpop.f32.mrf.mxu2 }
 0x60f   :  { %v1009_v58 = vadd.f32 %v2317_v46, %v1008_v36  ;;  %1149 = vmatmul.f32.gmra.mxu3 %v1093_v38 }
 0x611   :  { %v1057_v37 = vmul.f32 %v2322_v20, %v1009_v58 }
 0x613   :  { %v1078_v50 = vadd.f32 %v2328_v54, %v1057_v37 }
 0x615   :  { %v1094_v61 = vmax.f32 %v1078_v50, 0.0 }
 0x616   :  { %v1011_v39 = vpop.f32.mrf.mxu2 }
 0x617   :  { %v1012_v8 = vadd.f32 %v2317_v46, %v1011_v39  ;;  %1152 = vmatmul.f32.gmra.mxu3 %v1094_v61 }
 0x619   :  { %v1058_v57 = vmul.f32 %v2322_v20, %v1012_v8 }
 0x61b   :  { %v1079_v44 = vadd.f32 %v2328_v54, %v1058_v57 }
 0x61d   :  { %v1095_v34 = vmax.f32 %v1079_v44, 0.0 }
 0x61e   :  { %v1014_v16 = vpop.f32.mrf.mxu2 }
 0x61f   :  { %v1015_v14 = vadd.f32 %v2317_v46, %v1014_v16  ;;  %1155 = vmatmul.f32.gmra.mxu3 %v1095_v34  ;;  %v2380_v34 = vld [vmem:[%s2456_s10 + $0x1] ss:$0 sm:$0xff]  ;;  %s1542_s10 = smov [#allocation10]  }
 0x620   :  { %v2385_v16 = vld [vmem:[%s2457_s11 + $0x1] ss:$0 sm:$0xff]  ;;  %s1257_s11 = sshll.u32 %s1542_s10, 4  ;;  %s1258_s11 = int_to_ptr.vmem [resolvable:$true] %s1257_s11 }
 0x621   :  { %v1059_v22 = vmul.f32 %v2322_v20, %v1015_v14 }
 0x623   :  { %v1080_v62 = vadd.f32 %v2328_v54, %v1059_v22 }
 0x625   :  { %v1096_v35 = vmax.f32 %v1080_v62, 0.0 }
 0x626   :  { %v1017_v2 = vpop.f32.mrf.mxu2 }
 0x627   :  { %v1018_v9 = vadd.f32 %v2317_v46, %v1017_v2  ;;  %1158 = vmatmul.f32.gmra.mxu3 %v1096_v35 }
 0x629   :  { %v1060_v11 = vmul.f32 %v2322_v20, %v1018_v9 }
 0x62b   :  { %v1081_v59 = vadd.f32 %v2328_v54, %v1060_v11 }
 0x62d   :  { %v1097_v25 = vmax.f32 %v1081_v59, 0.0 }
 0x62e   :  { %v1020_v29 = vpop.f32.mrf.mxu2 }
 0x62f   :  { %v1021_v47 = vadd.f32 %v2317_v46, %v1020_v29  ;;  %1161 = vmatmul.f32.gmra.mxu3 %v1097_v25 }
 0x631   :  { %v1061_v24 = vmul.f32 %v2322_v20, %v1021_v47 }
 0x633   :  { %v1082_v30 = vadd.f32 %v2328_v54, %v1061_v24 }
 0x635   :  { %v1098_v48 = vmax.f32 %v1082_v30, 0.0 }
 0x636   :  { %v1023_v53 = vpop.f32.mrf.mxu2 }
 0x637   :  { %v1024_v4 = vadd.f32 %v2317_v46, %v1023_v53  ;;  %1164 = vmatmul.f32.gmra.mxu3 %v1098_v48 }
 0x639   :  { %v1062_v40 = vmul.f32 %v2322_v20, %v1024_v4 }
 0x63b   :  { %v1083_v26 = vadd.f32 %v2328_v54, %v1062_v40 }
 0x63d   :  { %v1099_v0 = vmax.f32 %v1083_v26, 0.0 }
 0x63e   :  { %v1026_v28 = vpop.f32.mrf.mxu2 }
 0x63f   :  { %v1027_v41 = vadd.f32 %v2317_v46, %v1026_v28  ;;  %1167 = vmatmul.f32.gmra.mxu3 %v1099_v0 }
 0x641   :  { %v1063_v23 = vmul.f32 %v2322_v20, %v1027_v41 }
 0x643   :  { %v1084_v6 = vadd.f32 %v2328_v54, %v1063_v23 }
 0x645   :  { %v1100_v21 = vmax.f32 %v1084_v6, 0.0 }
 0x646   :  { %v1029_v18 = vpop.f32.mrf.mxu2 }
 0x647   :  { %v1030_v55 = vadd.f32 %v2317_v46, %v1029_v18  ;;  %1170 = vmatmul.f32.gmra.mxu3 %v1100_v21 }
 0x649   :  { %v1064_v19 = vmul.f32 %v2322_v20, %v1030_v55 }
 0x64b   :  { %v1085_v1 = vadd.f32 %v2328_v54, %v1064_v19 }
 0x64d   :  { %v1101_v31 = vmax.f32 %v1085_v1, 0.0 }
 0x64e   :  { %v1032_v42 = vpop.f32.mrf.mxu2 }
 0x64f   :  { %v1033_v10 = vadd.f32 %v2317_v46, %v1032_v42  ;;  %1173 = vmatmul.f32.gmra.mxu3 %v1101_v31 }
 0x651   :  { %v1065_v27 = vmul.f32 %v2322_v20, %v1033_v10 }
 0x653   :  { %v1086_v3 = vadd.f32 %v2328_v54, %v1065_v27 }
 0x655   :  { %v1102_v60 = vmax.f32 %v1086_v3, 0.0 }
 0x656   :  { %v1035_v32 = vpop.f32.mrf.mxu2 }
 0x657   :  { %v1036_v56 = vadd.f32 %v2317_v46, %v1035_v32  ;;  %1176 = vmatmul.f32.gmra.mxu3 %v1102_v60 }
 0x659   :  { %v1066_v15 = vmul.f32 %v2322_v20, %v1036_v56 }
 0x65b   :  { %v1087_v63 = vadd.f32 %v2328_v54, %v1066_v15 }
 0x65d   :  { %v1103_v17 = vmax.f32 %v1087_v63, 0.0 }
 0x65e   :  { %v1038_v45 = vpop.f32.mrf.mxu2 }
 0x65f   :  { %v1039_v5 = vadd.f32 %v2317_v46, %v1038_v45  ;;  %1179 = vmatmul.f32.gmra.mxu3 %v1103_v17 }
 0x661   :  { %v1067_v43 = vmul.f32 %v2322_v20, %v1039_v5 }
 0x663   :  { %v1088_v13 = vadd.f32 %v2328_v54, %v1067_v43 }
 0x665   :  { %v1104_v33 = vmax.f32 %v1088_v13, 0.0 }
 0x666   :  { %v1041_v12 = vpop.f32.mrf.mxu2 }
 0x667   :  { %v1042_v49 = vadd.f32 %v2317_v46, %v1041_v12  ;;  %1182 = vmatmul.f32.gmra.mxu3 %v1104_v33 }
 0x669   :  { %v1068_v51 = vmul.f32 %v2322_v20, %v1042_v49 }
 0x66b   :  { %v1089_v7 = vadd.f32 %v2328_v54, %v1068_v51 }
 0x66d   :  { %v1105_v52 = vmax.f32 %v1089_v7, 0.0 }
 0x66e   :  { %v1044_v38 = vpop.f32.mrf.mxu2 }
 0x66f   :  { %v1045_v36 = vadd.f32 %v2317_v46, %v1044_v38  ;;  %1185 = vmatmul.f32.gmra.mxu3 %v1105_v52 }
 0x671   :  { %v1069_v58 = vmul.f32 %v2322_v20, %v1045_v36 }
 0x673   :  { %v1090_v37 = vadd.f32 %v2328_v54, %v1069_v58 }
 0x675   :  { %v1106_v50 = vmax.f32 %v1090_v37, 0.0 }
 0x676   :  { %v1047_v61 = vpop.f32.mrf.mxu2 }
 0x677   :  { %v1048_v39 = vadd.f32 %v2317_v46, %v1047_v61  ;;  %1188 = vmatmul.f32.gmra.mxu3 %v1106_v50 }
 0x679   :  { %v1070_v8 = vmul.f32 %v2322_v20, %v1048_v39  ;;  %v2391_v20 = vld [vmem:[%s2458_s12 + $0x1] ss:$0 sm:$0xff] }
 0x67b   :  { %v1091_v57 = vadd.f32 %v2328_v54, %v1070_v8 }
 0x67d   :  { %v1107_v44 = vmax.f32 %v1091_v57, 0.0 }
 0x67f   :  { %1191 = vmatmul.f32.gmra.mxu3 %v1107_v44 }
 0x68a   :  { %v1147_v14 = vpop.f32.mrf.mxu3 }
 0x68b   :  { %v1148_v46 = vadd.f32 %v2380_v34, %v1147_v14 }
 0x68d   :  { %v1200_v54 = vmul.f32 %v2385_v16, %v1148_v46 }
 0x68f   :  { %v1221_v22 = vadd.f32 %v2391_v20, %v1200_v54 }
 0x691   :  { %1237 = vst [vmem:[#allocation10] sm:$0xff] %v1221_v22 }
 0x692   :  { %v1150_v62 = vpop.f32.mrf.mxu3 }
 0x693   :  { %v1151_v35 = vadd.f32 %v2380_v34, %v1150_v62 }
 0x695   :  { %v1201_v2 = vmul.f32 %v2385_v16, %v1151_v35 }
 0x697   :  { %v1222_v9 = vadd.f32 %v2391_v20, %v1201_v2 }
 0x699   :  { %1238 = vst [vmem:[#allocation10 + $0x8] sm:$0xff] %v1222_v9 }
 0x69a   :  { %v1153_v11 = vpop.f32.mrf.mxu3 }
 0x69b   :  { %v1154_v59 = vadd.f32 %v2380_v34, %v1153_v11 }
 0x69d   :  { %v1202_v25 = vmul.f32 %v2385_v16, %v1154_v59 }
 0x69f   :  { %v1223_v29 = vadd.f32 %v2391_v20, %v1202_v25 }
 0x6a1   :  { %1239 = vst [vmem:[#allocation10 + $0x10] sm:$0xff] %v1223_v29 }
 0x6a2   :  { %v1156_v47 = vpop.f32.mrf.mxu3 }
 0x6a3   :  { %v1157_v24 = vadd.f32 %v2380_v34, %v1156_v47 }
 0x6a5   :  { %v1203_v30 = vmul.f32 %v2385_v16, %v1157_v24 }
 0x6a7   :  { %v1224_v48 = vadd.f32 %v2391_v20, %v1203_v30 }
 0x6a9   :  { %1240 = vst [vmem:[#allocation10 + $0x18] sm:$0xff] %v1224_v48 }
 0x6aa   :  { %v1159_v53 = vpop.f32.mrf.mxu3 }
 0x6ab   :  { %v1160_v4 = vadd.f32 %v2380_v34, %v1159_v53 }
 0x6ad   :  { %v1204_v40 = vmul.f32 %v2385_v16, %v1160_v4 }
 0x6af   :  { %v1225_v26 = vadd.f32 %v2391_v20, %v1204_v40 }
 0x6b1   :  { %1241 = vst [vmem:[#allocation10 + $0x20] sm:$0xff] %v1225_v26 }
 0x6b2   :  { %v1162_v0 = vpop.f32.mrf.mxu3 }
 0x6b3   :  { %v1163_v28 = vadd.f32 %v2380_v34, %v1162_v0 }
 0x6b5   :  { %v1205_v41 = vmul.f32 %v2385_v16, %v1163_v28 }
 0x6b7   :  { %v1226_v23 = vadd.f32 %v2391_v20, %v1205_v41 }
 0x6b9   :  { %1242 = vst [vmem:[#allocation10 + $0x28] sm:$0xff] %v1226_v23 }
 0x6ba   :  { %v1165_v6 = vpop.f32.mrf.mxu3 }
 0x6bb   :  { %v1166_v21 = vadd.f32 %v2380_v34, %v1165_v6 }
 0x6bd   :  { %v1206_v18 = vmul.f32 %v2385_v16, %v1166_v21 }
 0x6bf   :  { %v1227_v55 = vadd.f32 %v2391_v20, %v1206_v18 }
 0x6c1   :  { %1243 = vst [vmem:[#allocation10 + $0x30] sm:$0xff] %v1227_v55 }
 0x6c2   :  { %v1168_v19 = vpop.f32.mrf.mxu3 }
 0x6c3   :  { %v1169_v1 = vadd.f32 %v2380_v34, %v1168_v19 }
 0x6c5   :  { %v1207_v31 = vmul.f32 %v2385_v16, %v1169_v1 }
 0x6c7   :  { %v1228_v42 = vadd.f32 %v2391_v20, %v1207_v31 }
 0x6c9   :  { %1244 = vst [vmem:[#allocation10 + $0x38] sm:$0xff] %v1228_v42 }
 0x6ca   :  { %v1171_v10 = vpop.f32.mrf.mxu3 }
 0x6cb   :  { %v1172_v27 = vadd.f32 %v2380_v34, %v1171_v10 }
 0x6cd   :  { %v1208_v3 = vmul.f32 %v2385_v16, %v1172_v27 }
 0x6cf   :  { %v1229_v60 = vadd.f32 %v2391_v20, %v1208_v3 }
 0x6d1   :  { %1245 = vst [vmem:[#allocation10 + $0x40] sm:$0xff] %v1229_v60 }
 0x6d2   :  { %v1174_v32 = vpop.f32.mrf.mxu3 }
 0x6d3   :  { %v1175_v56 = vadd.f32 %v2380_v34, %v1174_v32 }
 0x6d5   :  { %v1209_v15 = vmul.f32 %v2385_v16, %v1175_v56 }
 0x6d7   :  { %v1230_v63 = vadd.f32 %v2391_v20, %v1209_v15 }
 0x6d9   :  { %1246 = vst [vmem:[#allocation10 + $0x48] sm:$0xff] %v1230_v63 }
 0x6da   :  { %v1177_v17 = vpop.f32.mrf.mxu3 }
 0x6db   :  { %v1178_v45 = vadd.f32 %v2380_v34, %v1177_v17 }
 0x6dd   :  { %v1210_v5 = vmul.f32 %v2385_v16, %v1178_v45 }
 0x6df   :  { %v1231_v43 = vadd.f32 %v2391_v20, %v1210_v5 }
 0x6e1   :  { %1247 = vst [vmem:[#allocation10 + $0x50] sm:$0xff] %v1231_v43 }
 0x6e2   :  { %v1180_v13 = vpop.f32.mrf.mxu3 }
 0x6e3   :  { %v1181_v33 = vadd.f32 %v2380_v34, %v1180_v13 }
 0x6e5   :  { %v1211_v12 = vmul.f32 %v2385_v16, %v1181_v33 }
 0x6e7   :  { %v1232_v49 = vadd.f32 %v2391_v20, %v1211_v12 }
 0x6e9   :  { %1248 = vst [vmem:[#allocation10 + $0x58] sm:$0xff] %v1232_v49 }
 0x6ea   :  { %v1183_v51 = vpop.f32.mrf.mxu3 }
 0x6eb   :  { %v1184_v7 = vadd.f32 %v2380_v34, %v1183_v51 }
 0x6ed   :  { %v1212_v52 = vmul.f32 %v2385_v16, %v1184_v7 }
 0x6ef   :  { %v1233_v38 = vadd.f32 %v2391_v20, %v1212_v52 }
 0x6f1   :  { %1249 = vst [vmem:[#allocation10 + $0x60] sm:$0xff] %v1233_v38 }
 0x6f2   :  { %v1186_v36 = vpop.f32.mrf.mxu3 }
 0x6f3   :  { %v1187_v58 = vadd.f32 %v2380_v34, %v1186_v36 }
 0x6f5   :  { %v1213_v37 = vmul.f32 %v2385_v16, %v1187_v58 }
 0x6f7   :  { %v1234_v50 = vadd.f32 %v2391_v20, %v1213_v37 }
 0x6f9   :  { %1250 = vst [vmem:[#allocation10 + $0x68] sm:$0xff] %v1234_v50 }
 0x6fa   :  { %v1189_v61 = vpop.f32.mrf.mxu3 }
 0x6fb   :  { %v1190_v39 = vadd.f32 %v2380_v34, %v1189_v61 }
 0x6fd   :  { %v1214_v8 = vmul.f32 %v2385_v16, %v1190_v39 }
 0x6ff   :  { %v1235_v57 = vadd.f32 %v2391_v20, %v1214_v8 }
 0x701   :  { %1251 = vst [vmem:[#allocation10 + $0x70] sm:$0xff] %v1235_v57 }
 0x702   :  { %v1192_v44 = vpop.f32.mrf.mxu3 }
 0x703   :  { %v1193_v14 = vadd.f32 %v2380_v34, %v1192_v44 }
 0x705   :  { %v1215_v46 = vmul.f32 %v2385_v16, %v1193_v14 }
 0x707   :  { %v1236_v54 = vadd.f32 %v2391_v20, %v1215_v46 }
 0x709   :  { %1252 = vst [vmem:[#allocation10 + $0x78] sm:$0xff] %v1236_v54 }
 0x70a   :  { %1265 = dma.vmem_to_hbm [thread:$0]  %s1258_s11, 2048, %s1260_s27, [#allocation4], %s1535_s16, %s1535_s16, %s1536_s17  }
 0x70b   :  { %1532 = dma.done.wait [#allocation4], 2048  }
 0x70c   :  { %1533 = vsyncadd [#allocation4], 4294965248 }
 0x70d   :  { %1270 = vsyncpa [#allocation3], 1 }
 0x70e   :  { %1271 = vsyncpa [#allocation8], 1 }
 0x70f   :  { %1272 = vsyncpa [#allocation4], 1 }
 0x710   :  { %1273 = vsyncpa [#allocation5], 1 }

</bundles_post_ra>
